<compile_context>
chip_gen: v5e
topology: v5e:2x2
jax: 0.10.0
libtpu: 0.0.40
codegen_flags: <defaults>
</compile_context>

<pallas_src>
import functools

import jax
import jax.numpy as jnp
from jax import lax
from jax.experimental import pallas as pl
from jax.experimental.pallas import tpu as pltpu

_LANE = 128  # lane-chunk width for the interleave scatter


# --------------------------- constant 0/1 matrices -------------------------- #

def _scatter_mats(ch, dtype):
    """(2, ch, 2ch): place a (C, ch) phase into even / odd lanes of (C, 2ch)."""
    row = jnp.arange(ch, dtype=jnp.int32)[:, None]
    col = jnp.arange(2 * ch, dtype=jnp.int32)[None, :]
    s_even = (col == 2 * row).astype(dtype)
    s_odd = (col == 2 * row + 1).astype(dtype)
    return jnp.stack([s_even, s_odd], axis=0)


def _repeat_mat(ch, dtype):
    """(ch, 2ch): nearest x2 (y[:, q] = x[:, q // 2])."""
    row = jnp.arange(ch, dtype=jnp.int32)[:, None]
    col = jnp.arange(2 * ch, dtype=jnp.int32)[None, :]
    return (col // 2 == row).astype(dtype)


# ------------------------------- Pallas kernels ----------------------------- #

def _upsample_conv_kernel(x_ref, w_ref, b_ref, halo_ref, s_ref, o_ref, *,
                          compute_dtype, conv_precision, scatter_precision):
    """x_ref:    (1, C, Lt)       input tile
       w_ref:    (4C, C)          [W0; W1+W2; W0+W1; W2]   (compute dtype, constant)
       b_ref:    (C, 1)           bias, f32                (constant)
       halo_ref: (1, 1, C, 2)     [W0 @ x_left, W2 @ x_right] boundary contributions (f32)
       s_ref:    (2, ch, 2ch)     even/odd 0/1 scatter matrices (constant)
       o_ref:    (1, C, 2*Lt)     interleaved output tile
    """
    C, Lt = x_ref.shape[1], x_ref.shape[2]
    ch = s_ref.shape[1]

    x = x_ref[0].astype(compute_dtype)                               # (C, Lt)
    # Single stacked conv matmul -> four (C, Lt) partial products (f32 acc).
    p = jnp.dot(w_ref[...], x, preferred_element_type=jnp.float32,
                precision=conv_precision)                            # (4C, Lt)
    w0x = p[0 * C:1 * C]      # W0 . x
    w12x = p[1 * C:2 * C]     # (W1+W2) . x
    w01x = p[2 * C:3 * C]     # (W0+W1) . x
    w2x = p[3 * C:4 * C]      # W2 . x

    # +-1 shifts on the XLU applied to the partial products; the two boundary
    # lanes are replaced by the precomputed halo contributions.
    lane = lax.broadcasted_iota(jnp.int32, (C, Lt), 1)
    halo = halo_ref[0, 0]                                            # (C, 2) f32
    bias = b_ref[...]                                                # (C, 1) f32

    even = jnp.where(lane == 0, halo[:, 0:1],
                     pltpu.roll(w0x, shift=1, axis=1)) + w12x + bias
    odd = w01x + jnp.where(lane == Lt - 1, halo[:, 1:2],
                           pltpu.roll(w2x, shift=Lt - 1, axis=1)) + bias

    # Bias already added (scatter is a 0/1 permutation, so this is exact);
    # cast once to the scatter dtype (bf16 when the output is bf16).
    even = even.astype(s_ref.dtype)
    odd = odd.astype(s_ref.dtype)
    s_even = s_ref[0]
    s_odd = s_ref[1]

    # Interleave even/odd lane-chunk by lane-chunk; every store is a lane-dense
    # (C, 2*ch) store at a 2*ch-aligned static offset.
    for k in range(Lt // ch):
        y_k = (jnp.dot(even[:, k * ch:(k + 1) * ch], s_even,
                       preferred_element_type=jnp.float32,
                       precision=scatter_precision)
               + jnp.dot(odd[:, k * ch:(k + 1) * ch], s_odd,
                         preferred_element_type=jnp.float32,
                         precision=scatter_precision))
        o_ref[0, :, 2 * k * ch:2 * (k + 1) * ch] = y_k.astype(o_ref.dtype)


def _upsample_only_kernel(x_ref, s_ref, o_ref, *, precision):
    """Nearest x2, interleaved output written directly (y[:, q] = x[:, q // 2])."""
    Lt = x_ref.shape[2]
    ch = s_ref.shape[0]
    x = x_ref[0].astype(s_ref.dtype)                                 # (C, Lt)
    s_rep = s_ref[...]
    for k in range(Lt // ch):
        y_k = jnp.dot(x[:, k * ch:(k + 1) * ch], s_rep,
                      preferred_element_type=jnp.float32, precision=precision)
        o_ref[0, :, 2 * k * ch:2 * (k + 1) * ch] = y_k.astype(o_ref.dtype)


# --------------------------------- Wrapper ---------------------------------- #

def _default_budget():
    """Per-generation (max_lt, vmem_limit_bytes); conservative if unknown/v7x."""
    try:
        kind = jax.devices()[0].device_kind.lower()
    except Exception:  # no devices / unusual backend
        kind = ""
    if any(t in kind for t in ("v4", "v5", "v6")):
        return 1024, 64 * 1024 * 1024     # 128 MiB physical VMEM: bigger tiles
    return 512, 32 * 1024 * 1024          # v7x (64 MiB physical) / unknown


def _pick_tile(L, max_lt, n_batch):
    """Largest 128-multiple tile <= max_lt dividing L (L is a 128-multiple)."""
    def best(limit):
        lt = min(L, max(_LANE, (limit // _LANE) * _LANE))
        while lt > _LANE and L % lt != 0:
            lt -= _LANE
        return lt
    lt = best(max_lt)
    # v7x has 2 TensorCores: guarantee >= 2 "parallel" grid steps at batch 1.
    if n_batch == 1 and L // lt < 2 and L > _LANE:
        lt = best(L // 2)
    return lt


def upsample1d(x, weight=None, bias=None, with_conv=True, *,
               compute_dtype=None, max_lt=None, vmem_limit_bytes=None):
    """x: (N, C, L). weight: (C, C, 3), bias: (C,) if with_conv.
       Returns (N, C, 2L) in x.dtype (nearest x2, then optional Conv1d k=3 p=1)."""
    N, C, L = x.shape
    out_dtype = x.dtype

    d_lt, d_vmem = _default_budget()
    max_lt = max_lt or d_lt
    vmem_limit_bytes = vmem_limit_bytes or d_vmem

    # Pad L up to a lane multiple; zero pad on the right matches the conv's
    # implicit zero padding, the tail is sliced off at the end.
    Lp = ((L + _LANE - 1) // _LANE) * _LANE
    if Lp != L:
        x = jnp.pad(x, ((0, 0), (0, 0), (0, Lp - L)))

    Lt = _pick_tile(Lp, max_lt, N)
    nL = Lp // Lt
    grid = (N, nL)
    ch = _LANE

    cp = pltpu.CompilerParams(
        dimension_semantics=("parallel", "parallel"),
        vmem_limit_bytes=vmem_limit_bytes)

    f32 = jnp.dtype(jnp.float32)
    bf16 = jnp.dtype(jnp.bfloat16)

    if not with_conv:
        rep_dtype = bf16 if jnp.dtype(out_dtype) == bf16 else f32
        rep_prec = None if rep_dtype == bf16 else lax.Precision.HIGHEST  # exact 0/1 dot
        s_rep = _repeat_mat(ch, rep_dtype)
        y = pl.pallas_call(
            functools.partial(_upsample_only_kernel, precision=rep_prec),
            out_shape=jax.ShapeDtypeStruct((N, C, 2 * Lp), out_dtype),
            grid=grid,
            in_specs=[pl.BlockSpec((1, C, Lt), lambda n, j: (n, 0, j)),
                      pl.BlockSpec((ch, 2 * ch), lambda n, j: (0, 0))],      # constant
            out_specs=pl.BlockSpec((1, C, 2 * Lt), lambda n, j: (n, 0, j)),
            compiler_params=cp,
        )(x, s_rep)
        return y[:, :, :2 * L] if Lp != L else y

    compute_dtype = jnp.dtype(compute_dtype) if compute_dtype is not None else jnp.dtype(x.dtype)
    conv_prec = lax.Precision.HIGHEST if compute_dtype == f32 else None
    if jnp.dtype(out_dtype) == bf16:
        scatter_dtype, scatter_prec = bf16, None
    else:
        scatter_dtype, scatter_prec = f32, lax.Precision.HIGHEST   # exact 0/1 scatter

    # Conv weights: stacked post-shift form (one (4C, C) @ (C, Lt) matmul).
    w = weight.astype(jnp.float32)
    w0, w1, w2 = w[:, :, 0], w[:, :, 1], w[:, :, 2]
    w_all = jnp.concatenate([w0, w1 + w2, w0 + w1, w2], axis=0).astype(compute_dtype)  # (4C, C)
    b2 = bias.astype(jnp.float32)[:, None]                                              # (C, 1)

    # Boundary halo *contributions* (tiny): for tile j,
    #   halo[..., 0] = W0 @ x[:, j*Lt - 1]   (0 at the global left edge)
    #   halo[..., 1] = W2 @ x[:, (j+1)*Lt]   (0 at the global right edge)
    xt = x.reshape(N, C, nL, Lt)
    zero = jnp.zeros((N, C, 1), x.dtype)
    left_col = jnp.concatenate([zero, xt[:, :, :nL - 1, Lt - 1]], axis=2)   # (N, C, nL)
    right_col = jnp.concatenate([xt[:, :, 1:, 0], zero], axis=2)            # (N, C, nL)
    hi = lax.Precision.HIGHEST
    el = jnp.einsum('oi,nij->noj', w0, left_col.astype(jnp.float32), precision=hi)
    er = jnp.einsum('oi,nij->noj', w2, right_col.astype(jnp.float32), precision=hi)
    halo = jnp.transpose(jnp.stack([el, er], axis=-1), (0, 2, 1, 3))        # (N, nL, C, 2)

    s_mats = _scatter_mats(ch, scatter_dtype)                               # (2, ch, 2ch)

    kernel = functools.partial(_upsample_conv_kernel,
                               compute_dtype=compute_dtype,
                               conv_precision=conv_prec,
                               scatter_precision=scatter_prec)
    y = pl.pallas_call(
        kernel,
        out_shape=jax.ShapeDtypeStruct((N, C, 2 * Lp), out_dtype),
        grid=grid,
        in_specs=[
            pl.BlockSpec((1, C, Lt), lambda n, j: (n, 0, j)),
            pl.BlockSpec((4 * C, C), lambda n, j: (0, 0)),           # constant: no re-DMA
            pl.BlockSpec((C, 1), lambda n, j: (0, 0)),               # constant
            pl.BlockSpec((1, 1, C, 2), lambda n, j: (n, j, 0, 0)),   # merged halo
            pl.BlockSpec((2, ch, 2 * ch), lambda n, j: (0, 0, 0)),   # constant scatter mats
        ],
        out_specs=pl.BlockSpec((1, C, 2 * Lt), lambda n, j: (n, 0, j)),
        compiler_params=cp,
    )(x, w_all, b2, halo, s_mats)
    return y[:, :, :2 * L] if Lp != L else y


# --------------------------------- Reference --------------------------------- #

def ref_upsample1d(x, weight=None, bias=None, with_conv=True):
    u = jnp.repeat(x, 2, axis=-1)                 # nearest, scale_factor=2.0
    if not with_conv:
        return u
    N, C, L2 = u.shape
    up = jnp.pad(u, ((0, 0), (0, 0), (1, 1)))
    hi = lax.Precision.HIGHEST
    y = (jnp.einsum('oi,nil->nol', weight[:, :, 0], up[:, :, 0:L2], precision=hi)
         + jnp.einsum('oi,nil->nol', weight[:, :, 1], up[:, :, 1:L2 + 1], precision=hi)
         + jnp.einsum('oi,nil->nol', weight[:, :, 2], up[:, :, 2:L2 + 2], precision=hi)
         + bias[None, :, None])
    return y


# ----------------------------------- Main ------------------------------------ #

if __name__ == "__main__":
    key = jax.random.PRNGKey(0)

    def make_params(kw, kb, C):
        # Deterministic synthetic Conv1d(C, C, 3) params (not a checkpoint).
        fan_in = C * 3
        bound = 1.0 / (fan_in ** 0.5)
        w = jax.random.uniform(kw, (C, C, 3), jnp.float32, -bound, bound)
        b = jax.random.uniform(kb, (C,), jnp.float32, -bound, bound)
        return w, b

    ks = jax.random.split(key, 10)

    # --- test 1: with_conv, single L tile, f32 --------------------------------
    N, C, L = 2, 8, 128
    x = jax.random.normal(ks[0], (N, C, L), jnp.float32)
    weight, bias = make_params(ks[1], ks[2], C)
    y = jax.block_until_ready(upsample1d(x, weight, bias, with_conv=True))
    y_ref = ref_upsample1d(x, weight, bias, with_conv=True)
    assert y.shape == (N, C, 2 * L), y.shape
    assert jnp.allclose(y, y_ref, atol=1e-5, rtol=1e-4), \
        float(jnp.max(jnp.abs(y - y_ref)))

    # --- test 2: with_conv, multiple L tiles (exercises halo handling) --------
    N2, C2, L2 = 2, 16, 256
    x2 = jax.random.normal(ks[3], (N2, C2, L2), jnp.float32)
    w2, b2v = make_params(ks[4], ks[5], C2)
    y2 = jax.block_until_ready(upsample1d(x2, w2, b2v, with_conv=True, max_lt=128))
    y2_ref = ref_upsample1d(x2, w2, b2v, with_conv=True)
    assert y2.shape == (N2, C2, 2 * L2), y2.shape
    assert jnp.allclose(y2, y2_ref, atol=1e-5, rtol=1e-4), \
        float(jnp.max(jnp.abs(y2 - y2_ref)))

    # --- test 3: bf16 I/O path (bf16 conv + bf16 scatter, f32 accumulate) -----
    y3 = jax.block_until_ready(
        upsample1d(x.astype(jnp.bfloat16), weight, bias, with_conv=True))
    assert y3.dtype == jnp.bfloat16
    assert jnp.allclose(y3.astype(jnp.float32), y_ref, atol=5e-2, rtol=5e-2), \
        float(jnp.max(jnp.abs(y3.astype(jnp.float32) - y_ref)))

    # --- test 4: with_conv=False (pure nearest upsample, interleaved write) ---
    y4 = jax.block_until_ready(upsample1d(x, with_conv=False))
    y4_ref = ref_upsample1d(x, with_conv=False)
    assert y4.shape == (N, C, 2 * L), y4.shape
    assert jnp.allclose(y4, y4_ref, atol=1e-4, rtol=1e-4), \
        float(jnp.max(jnp.abs(y4 - y4_ref)))

    # --- test 5: non-128-multiple length (padding path), batch 1 --------------
    N5, C5, L5 = 1, 8, 100
    x5 = jax.random.normal(ks[6], (N5, C5, L5), jnp.float32)
    w5, b5 = make_params(ks[7], ks[8], C5)
    y5 = jax.block_until_ready(upsample1d(x5, w5, b5, with_conv=True))
    y5_ref = ref_upsample1d(x5, w5, b5, with_conv=True)
    assert y5.shape == (N5, C5, 2 * L5), y5.shape
    assert jnp.allclose(y5, y5_ref, atol=1e-5, rtol=1e-4), \
        float(jnp.max(jnp.abs(y5 - y5_ref)))

    print("KERNEL_OK")
</pallas_src>

<mosaic_0001>
module attributes {stable_mosaic.version = 11 : i64} {
  func.func @_upsample_conv_kernel(%arg0: i32, %arg1: i32, %arg2: memref<1x8x128xf32, #tpu.memory_space<vmem>>, %arg3: memref<32x8xf32, #tpu.memory_space<vmem>>, %arg4: memref<8x1xf32, #tpu.memory_space<vmem>>, %arg5: memref<1x1x8x2xf32, #tpu.memory_space<vmem>>, %arg6: memref<2x128x256xf32, #tpu.memory_space<vmem>>, %arg7: memref<1x8x256xf32, #tpu.memory_space<vmem>>) attributes {dimension_semantics = [#tpu.dimension_semantics<parallel>, #tpu.dimension_semantics<parallel>], iteration_bounds = array<i64: 2, 1>, scalar_prefetch = 0 : i64, scratch_operands = 0 : i64, tpu.core_type = #tpu.core_type<tc>, window_params = [{transform_indices = @transform_0, window_bounds = array<i64: 1, 8, 128>}, {pipeline_mode = #tpu.pipeline_mode<synchronous>, transform_indices = @transform_1, window_bounds = array<i64: 32, 8>}, {pipeline_mode = #tpu.pipeline_mode<synchronous>, transform_indices = @transform_2, window_bounds = array<i64: 8, 1>}, {transform_indices = @transform_3, window_bounds = array<i64: 1, 1, 8, 2>}, {pipeline_mode = #tpu.pipeline_mode<synchronous>, transform_indices = @transform_4, window_bounds = array<i64: 2, 128, 256>}, {transform_indices = @transform_5, window_bounds = array<i64: 1, 8, 256>}]} {
    %c0 = arith.constant 0 : index
    %c0_0 = arith.constant 0 : index
    %c0_1 = arith.constant 0 : index
    %0 = vector.load %arg2[%c0, %c0_0, %c0_1] : memref<1x8x128xf32, #tpu.memory_space<vmem>>, vector<1x8x128xf32>
    %1 = vector.shape_cast %0 : vector<1x8x128xf32> to vector<8x128xf32>
    %c0_2 = arith.constant 0 : index
    %c0_3 = arith.constant 0 : index
    %2 = vector.load %arg3[%c0_2, %c0_3] : memref<32x8xf32, #tpu.memory_space<vmem>>, vector<32x8xf32>
    %cst = arith.constant dense<0.000000e+00> : vector<32x128xf32>
    %3 = tpu.matmul %2, %1, %cst {dimension_numbers = #tpu.dot_dimension_numbers<[1], [0], [0], [1], [0, 0, 1, 1], [], []>, precision = #tpu.contract_precision<fp32>} : vector<32x8xf32>, vector<8x128xf32>, vector<32x128xf32> -> vector<32x128xf32>
    %4 = vector.extract_strided_slice %3 {offsets = [0, 0], sizes = [8, 128], strides = [1, 1]} : vector<32x128xf32> to vector<8x128xf32>
    %5 = vector.extract_strided_slice %3 {offsets = [8, 0], sizes = [8, 128], strides = [1, 1]} : vector<32x128xf32> to vector<8x128xf32>
    %6 = vector.extract_strided_slice %3 {offsets = [16, 0], sizes = [8, 128], strides = [1, 1]} : vector<32x128xf32> to vector<8x128xf32>
    %7 = vector.extract_strided_slice %3 {offsets = [24, 0], sizes = [8, 128], strides = [1, 1]} : vector<32x128xf32> to vector<8x128xf32>
    %8 = tpu.iota {dimensions = array<i32: 1>} : vector<8x128xi32>
    %c0_4 = arith.constant 0 : index
    %c0_5 = arith.constant 0 : index
    %c0_6 = arith.constant 0 : index
    %c0_7 = arith.constant 0 : index
    %9 = vector.load %arg5[%c0_4, %c0_5, %c0_6, %c0_7] : memref<1x1x8x2xf32, #tpu.memory_space<vmem>>, vector<1x1x8x2xf32>
    %10 = vector.shape_cast %9 : vector<1x1x8x2xf32> to vector<8x2xf32>
    %c0_8 = arith.constant 0 : index
    %c0_9 = arith.constant 0 : index
    %11 = vector.load %arg4[%c0_8, %c0_9] : memref<8x1xf32, #tpu.memory_space<vmem>>, vector<8x1xf32>
    %c0_i32 = arith.constant 0 : i32
    %12 = vector.broadcast %c0_i32 : i32 to vector<8x128xi32>
    %13 = arith.cmpi eq, %8, %12 : vector<8x128xi32>
    %14 = vector.extract_strided_slice %10 {offsets = [0, 0], sizes = [8, 1], strides = [1, 1]} : vector<8x2xf32> to vector<8x1xf32>
    %c1_i32 = arith.constant 1 : i32
    %15 = tpu.dynamic_rotate %4 by %c1_i32 dim 1 : vector<8x128xf32>, i32 -> vector<8x128xf32>
    %16 = vector.shape_cast %14 : vector<8x1xf32> to vector<8x1xf32>
    %17 = vector.broadcast %16 : vector<8x1xf32> to vector<8x128xf32>
    %18 = arith.select %13, %17, %15 : vector<8x128xi1>, vector<8x128xf32>
    %19 = arith.addf %18, %5 : vector<8x128xf32>
    %20 = vector.broadcast %11 : vector<8x1xf32> to vector<8x128xf32>
    %21 = arith.addf %19, %20 : vector<8x128xf32>
    %c127_i32 = arith.constant 127 : i32
    %22 = vector.broadcast %c127_i32 : i32 to vector<8x128xi32>
    %23 = arith.cmpi eq, %8, %22 : vector<8x128xi32>
    %24 = vector.extract_strided_slice %10 {offsets = [0, 1], sizes = [8, 1], strides = [1, 1]} : vector<8x2xf32> to vector<8x1xf32>
    %c127_i32_10 = arith.constant 127 : i32
    %25 = tpu.dynamic_rotate %7 by %c127_i32_10 dim 1 : vector<8x128xf32>, i32 -> vector<8x128xf32>
    %26 = vector.shape_cast %24 : vector<8x1xf32> to vector<8x1xf32>
    %27 = vector.broadcast %26 : vector<8x1xf32> to vector<8x128xf32>
    %28 = arith.select %23, %27, %25 : vector<8x128xi1>, vector<8x128xf32>
    %29 = arith.addf %6, %28 : vector<8x128xf32>
    %30 = vector.broadcast %11 : vector<8x1xf32> to vector<8x128xf32>
    %31 = arith.addf %29, %30 : vector<8x128xf32>
    %c0_11 = arith.constant 0 : index
    %c0_12 = arith.constant 0 : index
    %c0_13 = arith.constant 0 : index
    %32 = vector.load %arg6[%c0_11, %c0_12, %c0_13] : memref<2x128x256xf32, #tpu.memory_space<vmem>>, vector<1x128x256xf32>
    %33 = vector.shape_cast %32 : vector<1x128x256xf32> to vector<128x256xf32>
    %c1 = arith.constant 1 : index
    %c0_14 = arith.constant 0 : index
    %c0_15 = arith.constant 0 : index
    %34 = vector.load %arg6[%c1, %c0_14, %c0_15] : memref<2x128x256xf32, #tpu.memory_space<vmem>>, vector<1x128x256xf32>
    %35 = vector.shape_cast %34 : vector<1x128x256xf32> to vector<128x256xf32>
    %cst_16 = arith.constant dense<0.000000e+00> : vector<8x256xf32>
    %36 = tpu.matmul %21, %33, %cst_16 {dimension_numbers = #tpu.dot_dimension_numbers<[1], [0], [0], [1], [0, 0, 1, 1], [], []>, precision = #tpu.contract_precision<fp32>} : vector<8x128xf32>, vector<128x256xf32>, vector<8x256xf32> -> vector<8x256xf32>
    %cst_17 = arith.constant dense<0.000000e+00> : vector<8x256xf32>
    %37 = tpu.matmul %31, %35, %cst_17 {dimension_numbers = #tpu.dot_dimension_numbers<[1], [0], [0], [1], [0, 0, 1, 1], [], []>, precision = #tpu.contract_precision<fp32>} : vector<8x128xf32>, vector<128x256xf32>, vector<8x256xf32> -> vector<8x256xf32>
    %38 = arith.addf %36, %37 : vector<8x256xf32>
    %c0_18 = arith.constant 0 : index
    %c0_19 = arith.constant 0 : index
    %c0_20 = arith.constant 0 : index
    %39 = vector.load %arg7[%c0_18, %c0_19, %c0_20] : memref<1x8x256xf32, #tpu.memory_space<vmem>>, vector<1x8x256xf32>
    %40 = vector.shape_cast %39 : vector<1x8x256xf32> to vector<8x256xf32>
    %41 = vector.shape_cast %38 : vector<8x256xf32> to vector<1x8x256xf32>
    tpu.vector_store %arg7[%c0_18, %c0_19, %c0_20], %41 {strides = array<i32>} : memref<1x8x256xf32, #tpu.memory_space<vmem>>, vector<1x8x256xf32>,
    return
  }
  func.func @transform_0(%arg0: i32, %arg1: i32) -> (i32, i32, i32) {
    %c0_i32 = arith.constant 0 : i32
    %c0_i32_0 = arith.constant 0 : i32
    return %arg0, %c0_i32, %arg1 : i32, i32, i32
  }
  func.func @transform_1(%arg0: i32, %arg1: i32) -> (i32, i32) {
    %c0_i32 = arith.constant 0 : i32
    %c0_i32_0 = arith.constant 0 : i32
    %c0_i32_1 = arith.constant 0 : i32
    return %c0_i32, %c0_i32_0 : i32, i32
  }
  func.func @transform_2(%arg0: i32, %arg1: i32) -> (i32, i32) {
    %c0_i32 = arith.constant 0 : i32
    %c0_i32_0 = arith.constant 0 : i32
    %c0_i32_1 = arith.constant 0 : i32
    return %c0_i32, %c0_i32_0 : i32, i32
  }
  func.func @transform_3(%arg0: i32, %arg1: i32) -> (i32, i32, i32, i32) {
    %c0_i32 = arith.constant 0 : i32
    %c0_i32_0 = arith.constant 0 : i32
    %c0_i32_1 = arith.constant 0 : i32
    return %arg0, %arg1, %c0_i32, %c0_i32_0 : i32, i32, i32, i32
  }
  func.func @transform_4(%arg0: i32, %arg1: i32) -> (i32, i32, i32) {
    %c0_i32 = arith.constant 0 : i32
    %c0_i32_0 = arith.constant 0 : i32
    %c0_i32_1 = arith.constant 0 : i32
    %c0_i32_2 = arith.constant 0 : i32
    return %c0_i32, %c0_i32_0, %c0_i32_1 : i32, i32, i32
  }
  func.func @transform_5(%arg0: i32, %arg1: i32) -> (i32, i32, i32) {
    %c0_i32 = arith.constant 0 : i32
    %c0_i32_0 = arith.constant 0 : i32
    return %arg0, %c0_i32, %arg1 : i32, i32, i32
  }
}

</mosaic_0001>

<bundles_post_ra>
// kernel: tpu_custom_call.1
= control target key start
LH: loop header
LB: loop body
LE: loop exit
PB: predicated region body
PF: predicated region fallthrough
CT: control target
= control target key end

     0   :  { %10 = vsyncpa [#allocation3], 0  ;;  %s3536_s0 = inlined_call_operand.vmem [shape: f32[2,8,128], index: 0, kind: input, shape index: {}]   ;;  %s3537_s1 = inlined_call_operand.vmem [shape: f32[32,8], index: 1, kind: input, shape index: {}]   ;;  %s3538_s2 = inlined_call_operand.vmem [shape: f32[8,1], index: 2, kind: input, shape index: {}]   ;;  %s3539_s3 = inlined_call_operand.vmem [shape: f32[2,1,8,2], index: 3, kind: input, shape index: {}]   ;;  %s3540_s4 = inlined_call_operand.hbm [shape: f32[2,128,256], index: 4, kind: input, shape index: {}]   ;;  %s3541_s5 = inlined_call_operand.hbm [shape: f32[2,8,256], index: 5, kind: output, shape index: {}]  }
   0x1   :  { %11 = vsyncpa [#allocation4], 0 }
   0x2   :  { %13 = vsyncpa [#allocation4 + $0x1], 0  ;;  %s2372_s18 = smov 0   ;;  %s2374_s19 = smov 0  }
   0x3   :  { %s2376_s20 = smov 0   ;;  %s2378_s21 = smov 0  }
   0x4   :  { %s2380_s22 = smov 0   ;;  %s2382_s23 = smov 0  }
   0x5 LB: > { %s2128_s24 = sadd.s32 4294967295, %s2333_s23   ;;  %s2129_s25 = sadd.s32 4294967294, %s2333_s23   ;;  %s2333_s23 = sphi %s2382_s23, %s19_s23   ;;  %s2329_s22 = sphi %s2380_s22, %s3620_s22   ;;  %s2325_s21 = sphi %s2378_s21, %s3619_s21   ;;  %s2321_s20 = sphi %s2376_s20, %s3618_s20   ;;  %s2317_s19 = sphi %s2374_s19, %s3617_s19   ;;  %s2313_s18 = sphi %s2372_s18, %s3616_s18  }
   0x6   : > { %s31_s26 = sadd.s32 1, %s2329_s22  ;;  %s159_s27 = sadd.s32 1, %s2321_s20 }
   0x7   : > { %p33_p0 = scmp.ge.s32.totalorder %s31_s26, 2  ;;  %p169_p1 = scmp.ne.s32.totalorder %s2321_s20, %s2317_s19 }
   0x8   : > { %p170_p2 = scmp.eq.s32.totalorder %s2128_s24, 1  ;;  %p175_p3 = scmp.ne.s32.totalorder %s2317_s19, %s2313_s18 }
   0x9   : > { %s3622_s26 = smov (%p33_p0, %s31_s26), 0  ;;  %p176_p5 = scmp.eq.s32.totalorder %s2129_s25, 1 }
   0xa   : > { %p2412_p4 = por %p170_p2, %p169_p1  ;;  %s154_s29 = ssub.s32 %s2329_s22, %s3622_s26 }
   0xb   : > { %p2130_p6 = scmp.ge.s32.totalorder %s2333_s23, 1  ;;  %p157_p7 = scmp.eq.s32.totalorder %s154_s29, 0 }
   0xc   : > { %p2419_p8 = por %p176_p5, %p175_p3  ;;  %p183_p9 = scmp.lt.s32.totalorder %s2333_s23, 3 }
   0xd   : > { %s2425_s6 = scalar_select %p157_p7, %s2321_s20, %s159_s27  }
   0xe   : > { %p184_p10 = pnand %p2130_p6, %p183_p9  ;;  %p2160_p11 = scmp.eq.s32.totalorder %s2128_s24, 0 }
   0xf   : > { %s200_s9 = sshll.u32 %s3540_s4, 4  ;;  %s2335_s10 = smov [#allocation2]   ;;  %s201_s9 = int_to_ptr.hbm [resolvable:$true] %s200_s9 }
  0x10   : > { %p2152_p12 = pneg %p184_p10  ;;  %s202_s11 = sshll.u32 %s2335_s10, 4  ;;  %s203_s11 = int_to_ptr.vmem [resolvable:$true] %s202_s11 }
  0x11   : > { %s2336_s12 = smov 256   ;;  %s2337_s13 = smov 16  }
  0x12   : > { %p2153_p13 = pnand %p2160_p11, %p2152_p12  ;;  %238 = sbr.rel (%p184_p10) target bundleno = 638 (0x27e), region = 40 }
  0x14   : > { %2155 = dma.hbm_to_vmem [thread:$0]  (!%p2153_p13), %s201_s9, 8192, %s203_s11, [#allocation3], %s2336_s12, %s2336_s12, %s2337_s13  }
  0x17   : > { %2304 = dma.done.wait (%p2160_p11), [#allocation3], 8192  }
  0x18   : > { %2306 = vsyncadd (%p2160_p11), [#allocation3], 4294959104  ;;  %p276_p0 = scmp.lt.s32.totalorder %s2325_s21, 1  ;;  %vm296_vm0 = vcmask 64512   ;;  %v294_v1 = vld [vmem:[%s3537_s1 + $0x10] sm:$0xff]  ;;  %v295_v2 = vld [vmem:[%s3537_s1 + $0x18] sm:$0xff] }
  0x19   : > { %v304_v4 = vsel %vm296_vm0, %v294_v1, 0  ;;  %v307_v5 = vsel %vm296_vm0, %v295_v2, 0  ;;  %v292_v6 = vld [vmem:[%s3537_s1] sm:$0xff]  ;;  %v293_v7 = vld [vmem:[%s3537_s1 + $0x8] sm:$0xff]  ;;  %v2338_v34 = vmov 0   ;;  %v2339_v53 = vmov 1  }
  0x1a   : > { %s2432_s14 = scalar_select %p276_p0, %s2325_s21, 1  ;;  %v342_v8 = vand.u32 4294901760, %v304_v4  ;;  %v350_v9 = vand.u32 4294901760, %v307_v5  ;;  %v298_v10 = vsel %vm296_vm0, %v292_v6, 0  ;;  %v301_v11 = vsel %vm296_vm0, %v293_v7, 0  ;;  %2219 = vset.pattern.permute.xlu1 %v2338_v34  ;;  %2220 = vset.pattern.permute.xlu2 %v2338_v34  ;;  %v551_v35 = vld [vmem:[%s3538_s2] sm:$0xff] }
  0x1b   : > { %v326_v13 = vand.u32 4294901760, %v298_v10  ;;  %v334_v14 = vand.u32 4294901760, %v301_v11  ;;  %564 = vperm.xlu1 %2219, %v551_v35   ;;  %2218 = vset.pattern.permute.xlu0 %v2339_v53  ;;  %v641_v62 = vld [vmem:[#allocation2 + $0x1f0] sm:$0xff]  ;;  %v639_v63 = vld [vmem:[#allocation2 + $0x1e0] sm:$0xff]  ;;  %s273_s25 = sand.u32 1, %s2317_s19   ;;  %s2143_s7 = sshll.u32 %s2325_s21, 4 }
  0x1c   : > { %s2136_s15 = sshll.u32 %s2432_s14, 3  ;;  %v343_v15 = vsub.f32 %v304_v4, %v342_v8  ;;  %v351_v16 = vsub.f32 %v307_v5, %v350_v9  ;;  %s2340_s14 = smov 1   ;;  %v2469_v1 = vand.u32 4294901760, %v641_v62  ;;  %v2471_v2 = vand.u32 4294901760, %v639_v63  ;;  %v635_v4 = vld [vmem:[#allocation2 + $0x1c0] sm:$0xff]  ;;  %v633_v5 = vld [vmem:[#allocation2 + $0x1b0] sm:$0xff] }
  0x1d   : > { %s282_s24 = scalar_lea.vmem %s3536_s0, %s2136_s15  ;;  %v327_v18 = vsub.f32 %v298_v10, %v326_v13  ;;  %v335_v19 = vsub.f32 %v301_v11, %v334_v14  ;;  %v631_v6 = vld [vmem:[#allocation2 + $0x1a0] sm:$0xff]  ;;  %v629_v11 = vld [vmem:[#allocation2 + $0x190] sm:$0xff]  ;;  %s2135_s27 = sshll.u32 %s273_s25, 4 }
  0x1e   : > { %v291_v0 = vld [vmem:[%s282_s24] sm:$0xff]  ;;  %v344_v20 = vand.u32 4294901760, %v343_v15  ;;  %v352_v24 = vand.u32 4294901760, %v351_v16  ;;  %s289_s24 = scalar_lea.vmem %s3539_s3, %s2136_s15  ;;  %v2479_v10 = vand.u32 4294901760, %v631_v6  ;;  %s2341_s15 = smov 127  }
  0x1f   : > { %v324_v3 = vand.u32 4294901760, %v291_v0  ;;  %v328_v22 = vand.u32 4294901760, %v327_v18  ;;  %v336_v27 = vand.u32 4294901760, %v335_v19  ;;  %v2466_v49 = vld [vmem:[%s289_s24] sm:$0xff]  ;;  %s275_s29 = scalar_lea.vmem [#allocation5], %s2135_s27  ;;  %s2023_s10 = scalar_lea.hbm %s3541_s5, %s2143_s7 }
  0x20   : > { %v345_v23 = vsub.f32 %v343_v15, %v344_v20  ;;  %v353_v30 = vsub.f32 %v351_v16, %v352_v24  ;;  %557 = vperm.xlu2 %2220, %v2466_v49   ;;  %s2025_s11 = sshll.u32 %s275_s29, 4  ;;  %s2027_s12 = sshll.u32 %s2023_s10, 4  ;;  %s2026_s11 = int_to_ptr.vmem [resolvable:$true] %s2025_s11  ;;  %s2028_s12 = int_to_ptr.hbm [resolvable:$true] %s2027_s12 }
  0x21   : > { %2144 = vmatpush.msra.mxu2 %v324_v3  ;;  %v375_v12 = vsub.f32 %v291_v0, %v324_v3  ;;  %325 = vmatpush.msra.mxu0 %v324_v3  ;;  %v329_v26 = vsub.f32 %v327_v18, %v328_v22  ;;  %v337_v31 = vsub.f32 %v335_v19, %v336_v27  ;;  %v637_v0 = vld [vmem:[#allocation2 + $0x1d0] sm:$0xff]  ;;  %s2010_s21 = scalar_lea.sflag [#allocation4], %s273_s25  ;;  %s2265_s13 = sshra.s32 %s2028_s12, 4  ;;  %s2266_s13 = int_to_ptr.hbm [resolvable:$true] %s2265_s13 }
  0x22   : > { %v346_v28 = vand.u32 4294901760, %v345_v23  ;;  %v354_v32 = vand.u32 4294901760, %v353_v30  ;;  %s2267_s16 = scalar_lea.hbm %s2266_s13, 16  ;;  %p2272_p5 = scmp.lt.s32.totalorder %s2266_s13, %s3541_s5 }
  0x23   : > { %v376_v17 = vand.u32 4294901760, %v375_v12  ;;  %414 = vmatpush.msrb.mxu2 %v375_v12  ;;  %v330_v29 = vand.u32 4294901760, %v329_v26  ;;  %v338_v33 = vand.u32 4294901760, %v337_v31  ;;  %p2268_p1 = scmp.ne.s32.totalorder %s2266_s13, %s2267_s16 }
  0x24   : > { %347 = vmatmul.f32.vlgmr.msra.gmra.mxu2 %v346_v28 }
  0x25   : > { %v377_v21 = vsub.f32 %v375_v12, %v376_v17  ;;  %496 = vmatpush.msrb.mxu0 %v376_v17  ;;  %v2482_v12 = vsub.f32 %v641_v62, %v2469_v1  ;;  %644 = vmatpush.msra.mxu2 %v2469_v1  ;;  %v625_v62 = vld [vmem:[#allocation2 + $0x170] sm:$0xff]  ;;  %p2269_p2 = pnand %p2268_p1, %p2412_p4 }
  0x26   : > { %331 = vmatmul.f32.vlgmr.msra.gmra.mxu0 %v330_v29 }
  0x27   : > { %v378_v25 = vand.u32 4294901760, %v377_v21  ;;  %787 = vmatpush.msra.mxu0 %v2482_v12  ;;  %646 = vmatpush.msra.mxu2 %v2471_v2  ;;  %p2270_p3 = pneg %p2269_p2 }
  0x29   : > { %2145 = vmatpush.msra.mxu3 %v378_v25  ;;  %379 = vmatpush.msra.mxu1 %v378_v25 }
  0x2a   : > { %389 = vmatmul.f32.vlgmr.msra.gmra.mxu3 %v342_v8  ;;  %381 = vmatmul.f32.vlgmr.msra.gmra.mxu1 %v326_v13 }
  0x2b   : > { %452 = vmatpush.msrb.mxu3 %v324_v3  ;;  %530 = vmatpush.msrb.mxu1 %v324_v3  ;;  %v2473_v3 = vand.u32 4294901760, %v637_v0 }
  0x2c   : > { %355 = vmatmul.f32.gmra.mxu2 %v354_v32 }
  0x2d   : > { %840 = vmatpush.msra.mxu1 %v2469_v1  ;;  %648 = vmatpush.msra.mxu2 %v2473_v3 }
  0x2e   : > { %339 = vmatmul.f32.gmra.mxu0 %v338_v33 }
  0x2f   : > { %842 = vmatpush.msra.mxu1 %v2471_v2 }
  0x31   : > { %844 = vmatpush.msra.mxu1 %v2473_v3 }
  0x32   : > { %393 = vmatmul.f32.gmra.mxu3 %v350_v9  ;;  %385 = vmatmul.f32.gmra.mxu1 %v334_v14 }
  0x34   : > { %417 = vmatmul.f32.vlgmr.msrb.gmra.mxu2 %v327_v18 }
  0x36   : > { %498 = vmatmul.f32.vlgmr.msrb.gmra.mxu0 %v326_v13 }
  0x3a   : > { %456 = vmatmul.f32.vlgmr.msrb.gmra.mxu3 %v328_v22  ;;  %532 = vmatmul.f32.vlgmr.msrb.gmra.mxu1 %v326_v13  ;;  %v2485_v13 = vsub.f32 %v639_v63, %v2471_v2  ;;  %v2506_v22 = vsub.f32 %v631_v6, %v2479_v10  ;;  %v623_v63 = vld [vmem:[#allocation2 + $0x160] sm:$0xff]  ;;  %v621_v6 = vld [vmem:[#allocation2 + $0x150] sm:$0xff] }
  0x3c   : > { %422 = vmatmul.f32.gmra.mxu2 %v335_v19  ;;  %v686_v19 = vand.u32 4294901760, %v2482_v12  ;;  %790 = vmatpush.msra.mxu0 %v2485_v13 }
  0x3e   : > { %502 = vmatmul.f32.gmra.mxu0 %v334_v14  ;;  %v687_v29 = vsub.f32 %v2482_v12, %v686_v19 }
  0x40   : > { %v688_v35 = vand.u32 4294901760, %v687_v29 }
  0x42   : > { %462 = vmatmul.f32.gmra.mxu3 %v336_v27  ;;  %536 = vmatmul.f32.gmra.mxu1 %v334_v14  ;;  %v2488_v14 = vsub.f32 %v637_v0, %v2473_v3 }
  0x43   : > { %689 = vmatpush.msra.mxu3 %v688_v35  ;;  %v619_v35 = vld [vmem:[#allocation2 + $0x140] sm:$0xff] }
  0x44   : > { %427 = vmatmul.f32.gmra.mxu2 %v343_v15  ;;  %v2492_v15 = vand.u32 4294901760, %v629_v11  ;;  %v698_v21 = vand.u32 4294901760, %v2488_v14  ;;  %793 = vmatpush.msra.mxu0 %v2488_v14 }
  0x46   : > { %506 = vmatmul.f32.gmra.mxu0 %v342_v8  ;;  %v2513_v26 = vsub.f32 %v629_v11, %v2492_v15  ;;  %v699_v31 = vsub.f32 %v2488_v14, %v698_v21 }
  0x4a   : > { %468 = vmatmul.f32.gmra.mxu3 %v344_v20  ;;  %540 = vmatmul.f32.gmra.mxu1 %v342_v8  ;;  %v2475_v8 = vand.u32 4294901760, %v635_v4  ;;  %v692_v20 = vand.u32 4294901760, %v2485_v13 }
  0x4c   : > { %432 = vmatmul.f32.gmra.mxu2 %v351_v16  ;;  %v2495_v17 = vsub.f32 %v635_v4, %v2475_v8  ;;  %v693_v30 = vsub.f32 %v2485_v13, %v692_v20  ;;  %846 = vmatpush.msra.mxu1 %v2475_v8  ;;  %v2563_v4 = vand.u32 4294901760, %v625_v62  ;;  %v632_v13 = vld [vmem:[#allocation2 + $0x1a8] sm:$0xff] }
  0x4d   : > { %650 = vmatpush.msra.mxu2 %v2475_v8 }
  0x4e   : > { %510 = vmatmul.f32.gmra.mxu0 %v350_v9  ;;  %v704_v25 = vand.u32 4294901760, %v2495_v17 }
  0x4f   : > { %796 = vmatpush.msra.mxu0 %v2495_v17 }
  0x52   : > { %474 = vmatmul.f32.gmra.mxu3 %v352_v24  ;;  %544 = vmatmul.f32.gmra.mxu1 %v350_v9  ;;  %v2477_v9 = vand.u32 4294901760, %v633_v5 }
  0x54   : > { %v2498_v18 = vsub.f32 %v633_v5, %v2477_v9  ;;  %848 = vmatpush.msra.mxu1 %v2477_v9  ;;  %652 = vmatpush.msra.mxu2 %v2477_v9  ;;  %v2565_v5 = vand.u32 4294901760, %v623_v63 }
  0x56   : > { %v710_v32 = vand.u32 4294901760, %v2498_v18  ;;  %799 = vmatpush.msra.mxu0 %v2498_v18  ;;  %850 = vmatpush.msra.mxu1 %v2479_v10 }
  0x57   : > { %654 = vmatpush.msra.mxu2 %v2479_v10 }
  0x58   : > { %802 = vmatpush.msra.mxu0 %v2506_v22  ;;  %852 = vmatpush.msra.mxu1 %v2492_v15 }
  0x59   : > { %656 = vmatpush.msra.mxu2 %v2492_v15 }
  0x5a   : > { %805 = vmatpush.msra.mxu0 %v2513_v26 }
  0xa3   : > { %v332_v36 = vpop.f32.mrf.mxu0 }
  0xa7   : > { %v382_v37 = vpop.f32.mrf.mxu1  ;;  %v348_v38 = vpop.f32.mrf.mxu2 }
  0xa8   : > { %v383_v48 = vadd.f32 %v382_v37, %v332_v36  ;;  %v694_v36 = vand.u32 4294901760, %v693_v30  ;;  %v705_v37 = vsub.f32 %v2495_v17, %v704_v25 }
  0xaa   : > { %695 = vmatpush.msra.mxu3 %v694_v36  ;;  %v2601_v36 = vand.u32 4294901760, %v619_v35 }
  0xab   : > { %v340_v41 = vpop.f32.mrf.mxu0 }
  0xad   : > { %v390_v39 = vpop.f32.mrf.mxu3 }
  0xae   : > { %v2455_v40 = vadd.f32 %v390_v39, %v348_v38  ;;  %v716_v38 = vand.u32 4294901760, %v2506_v22 }
  0xaf   : > { %v386_v42 = vpop.f32.mrf.mxu1  ;;  %v2457_v44 = vpop.f32.mrf.mxu2 }
  0xb0   : > { %v387_v43 = vadd.f32 %v386_v42, %v340_v41  ;;  %v711_v41 = vsub.f32 %v2498_v18, %v710_v32  ;;  %v722_v42 = vand.u32 4294901760, %v2513_v26 }
  0xb2   : > { %v712_v53 = vand.u32 4294901760, %v711_v41  ;;  %v2610_v41 = vsub.f32 %v619_v35, %v2601_v36 }
  0xb3   : > { %v499_v46 = vpop.f32.mrf.mxu0 }
  0xb5   : > { %v2459_v45 = vpop.f32.mrf.mxu3 }
  0xb7   : > { %v533_v47 = vpop.f32.mrf.mxu1  ;;  %v418_v50 = vpop.f32.mrf.mxu2 }
  0xb8   : > { %v419_v52 = vadd.f32 %v418_v50, %v383_v48  ;;  %v395_v48 = vadd.f32 %v2459_v45, %v2457_v44 }
  0xbb   : > { %v503_v56 = vpop.f32.mrf.mxu0 }
  0xbd   : > { %v457_v51 = vpop.f32.mrf.mxu3 }
  0xbe   : > { %v458_v54 = vadd.f32 %v457_v51, %v419_v52 }
  0xbf   : > { %v537_v58 = vpop.f32.mrf.mxu1  ;;  %v423_v59 = vpop.f32.mrf.mxu2 }
  0xc0   : > { %v500_v55 = vadd.f32 %v499_v46, %v458_v54  ;;  %v424_v61 = vadd.f32 %v423_v59, %v387_v43  ;;  %v706_v46 = vand.u32 4294901760, %v705_v37  ;;  %v723_v54 = vsub.f32 %v2513_v26, %v722_v42 }
  0xc2   : > { %v534_v57 = vadd.f32 %v533_v47, %v500_v55  ;;  %v717_v47 = vsub.f32 %v2506_v22, %v716_v38  ;;  %v628_v22 = vld [vmem:[#allocation2 + $0x188] sm:$0xff] }
  0xc3   : > { %v507_v24 = vpop.f32.mrf.mxu0 }
  0xc4   : > { %553 = vrot.lane.b32.xlu1 %v534_v57, %s2340_s14  ;;  %v718_v45 = vand.u32 4294901760, %v717_v47  ;;  %s2271_s14 = scalar_lea.hbm %s3541_s5, 32 }
  0xc5   : > { %v463_v60 = vpop.f32.mrf.mxu3  ;;  %p2273_p6 = scmp.lt.s32.totalorder %s2271_s14, %s2267_s16 }
  0xc6   : > { %v464_v7 = vadd.f32 %v463_v60, %v424_v61  ;;  %v627_v61 = vld [vmem:[#allocation2 + $0x180] sm:$0xff] }
  0xc7   : > { %v428_v27 = vpop.f32.mrf.mxu2  ;;  %v541_v34 = vpop.f32.mrf.mxu1  ;;  %v2561_v0 = vand.u32 4294901760, %v627_v61  ;;  %p2274_p7 = por %p2273_p6, %p2272_p5 }
  0xc8   : > { %v504_v16 = vadd.f32 %v503_v56, %v464_v7  ;;  %v429_v33 = vadd.f32 %v428_v27, %v2455_v40  ;;  %v700_v40 = vand.u32 4294901760, %v699_v31  ;;  %v2567_v7 = vand.u32 4294901760, %v621_v6 }
  0xc9   : > { %v2570_v11 = vsub.f32 %v627_v61, %v2561_v0  ;;  %854 = vmatpush.msra.mxu1 %v2561_v0  ;;  %658 = vmatpush.msra.mxu2 %v2561_v0  ;;  %p2275_p9 = pnand %p2274_p7, %p2270_p3 }
  0xca   : > { %v2508_v23 = vadd.f32 %v537_v58, %v504_v16  ;;  %701 = vmatpush.msra.mxu3 %v700_v40  ;;  %v724_v58 = vand.u32 4294901760, %v723_v54  ;;  %v2573_v16 = vsub.f32 %v625_v62, %v2563_v4  ;;  %v615_v54 = vld [vmem:[#allocation2 + $0x120] sm:$0xff] }
  0xcb   : > { %v511_v44 = vpop.f32.mrf.mxu0  ;;  %v728_v27 = vand.u32 4294901760, %v2570_v11  ;;  %808 = vmatpush.msra.mxu0 %v2570_v11  ;;  %856 = vmatpush.msra.mxu1 %v2563_v4 }
  0xcc   : > { %707 = vmatpush.msra.mxu3 %v706_v46  ;;  %660 = vmatpush.msra.mxu2 %v2563_v4  ;;  %v752_v46 = vand.u32 4294901760, %v2610_v41 }
  0xcd   : > { %v469_v28 = vpop.f32.mrf.mxu3  ;;  %v729_v31 = vsub.f32 %v2570_v11, %v728_v27  ;;  %811 = vmatpush.msra.mxu0 %v2573_v16  ;;  %858 = vmatpush.msra.mxu1 %v2565_v5 }
  0xce   : > { %v470_v39 = vadd.f32 %v469_v28, %v429_v33  ;;  %713 = vmatpush.msra.mxu3 %v712_v53  ;;  %v734_v28 = vand.u32 4294901760, %v2573_v16  ;;  %662 = vmatpush.msra.mxu2 %v2565_v5 }
  0xcf   : > { %v433_v51 = vpop.f32.mrf.mxu2  ;;  %v545_v57 = vpop.f32.mrf.mxu1  ;;  %v730_v37 = vand.u32 4294901760, %v729_v31  ;;  %860 = vmatpush.msra.mxu1 %v2567_v7 }
  0xd0   : > { %v508_v43 = vadd.f32 %v507_v24, %v470_v39  ;;  %v434_v55 = vadd.f32 %v433_v51, %v395_v48  ;;  %719 = vmatpush.msra.mxu3 %v718_v45  ;;  %v2581_v24 = vsub.f32 %v621_v6, %v2567_v7  ;;  %v735_v33 = vsub.f32 %v2573_v16, %v734_v28  ;;  %v613_v45 = vld [vmem:[#allocation2 + $0x110] sm:$0xff]  ;;  %v622_v16 = vld [vmem:[#allocation2 + $0x158] sm:$0xff] }
  0xd1   : > { %664 = vmatpush.msra.mxu2 %v2567_v7  ;;  %862 = vmatpush.msra.mxu1 %v2601_v36  ;;  %v753_v48 = vsub.f32 %v2610_v41, %v752_v46 }
  0xd2   : > { %v2549_v50 = vadd.f32 %v541_v34, %v508_v43  ;;  %725 = vmatpush.msra.mxu3 %v724_v58  ;;  %v746_v30 = vand.u32 4294901760, %v2581_v24  ;;  %v736_v39 = vand.u32 4294901760, %v735_v33  ;;  %v2635_v58 = vand.u32 4294901760, %v613_v45 }
  0xd3   : > { %666 = vmatpush.msra.mxu2 %v2601_v36  ;;  %v754_v51 = vand.u32 4294901760, %v753_v48 }
  0xd4   : > { %v747_v40 = vsub.f32 %v2581_v24, %v746_v30  ;;  %731 = vmatpush.msra.mxu3 %v730_v37  ;;  %v2644_v62 = vsub.f32 %v613_v45, %v2635_v58 }
  0xd5   : > { %v475_v52 = vpop.f32.mrf.mxu3 }
  0xd6   : > { %v476_v56 = vadd.f32 %v475_v52, %v434_v55  ;;  %737 = vmatpush.msra.mxu3 %v736_v39  ;;  %v748_v47 = vand.u32 4294901760, %v747_v40  ;;  %v617_v52 = vld [vmem:[#allocation2 + $0x130] sm:$0xff]  ;;  %v770_v33 = vand.u32 4294901760, %v2644_v62  ;;  %v642_v40 = vld [vmem:[#allocation2 + $0x1f8] sm:$0xff] }
  0xd7   : > { %v2621_v53 = vand.u32 4294901760, %v617_v52 }
  0xd8   : > { %v512_v59 = vadd.f32 %v511_v44, %v476_v56  ;;  %v2626_v44 = vand.u32 4294901760, %v615_v54  ;;  %v771_v37 = vsub.f32 %v2644_v62, %v770_v33 }
  0xd9   : > { %v2624_v55 = vsub.f32 %v617_v52, %v2621_v53  ;;  %864 = vmatpush.msra.mxu1 %v2621_v53  ;;  %668 = vmatpush.msra.mxu2 %v2621_v53 }
  0xda   : > { %v546_v60 = vadd.f32 %v545_v57, %v512_v59  ;;  %v2632_v57 = vsub.f32 %v615_v54, %v2626_v44  ;;  %v611_v59 = vld [vmem:[#allocation2 + $0x100] sm:$0xff] }
  0xdb   : > { %v758_v56 = vand.u32 4294901760, %v2624_v55  ;;  %866 = vmatpush.msra.mxu1 %v2626_v44  ;;  %670 = vmatpush.msra.mxu2 %v2626_v44 }
  0xdc   : > { %569 = vrot.lane.b32.xlu0 %v546_v60, %s2341_s15  ;;  %v764_v61 = vand.u32 4294901760, %v2632_v57 }
  0xdd   : > { %v759_v60 = vsub.f32 %v2624_v55, %v758_v56  ;;  %868 = vmatpush.msra.mxu1 %v2635_v58  ;;  %672 = vmatpush.msra.mxu2 %v2635_v58 }
  0xde   : > { %v765_v31 = vsub.f32 %v2632_v57, %v764_v61 }
  0xdf   : > { %v760_v6 = vand.u32 4294901760, %v759_v60 }
  0xe0   : > { %v766_v35 = vand.u32 4294901760, %v765_v31  ;;  %v634_v31 = vld [vmem:[#allocation2 + $0x1b8] sm:$0xff] }
  0xe1   : > { %v2701_v14 = vand.u32 4294901760, %v634_v31 }
  0xe4   : > { %572 = vperm.xlu0 %2218, %v2466_v49   ;;  %v2576_v49 = vsub.f32 %v623_v63, %v2565_v5  ;;  %v2647_v63 = vand.u32 4294901760, %v611_v59 }
  0xe6   : > { %v740_v29 = vand.u32 4294901760, %v2576_v49  ;;  %814 = vmatpush.msra.mxu0 %v2576_v49  ;;  %870 = vmatpush.msra.mxu1 %v2647_v63 }
  0xe7   : > { %674 = vmatpush.msra.mxu2 %v2647_v63 }
  0xe8   : > { %v741_v34 = vsub.f32 %v2576_v49, %v740_v29  ;;  %817 = vmatpush.msra.mxu0 %v2581_v24 }
  0xe9   : > { %881 = vmatpush.msrb.mxu2 %v686_v19  ;;  %v638_v19 = vld [vmem:[#allocation2 + $0x1d8] sm:$0xff] }
  0xea   : > { %v742_v43 = vand.u32 4294901760, %v741_v34  ;;  %820 = vmatpush.msra.mxu0 %v2610_v41  ;;  %v2656_v34 = vsub.f32 %v611_v59, %v2647_v63  ;;  %v2683_v59 = vand.u32 4294901760, %v638_v19 }
  0xeb   : > { %885 = vmatpush.msrb.mxu2 %v692_v20 }
  0xec   : > { %743 = vmatpush.msra.mxu3 %v742_v43  ;;  %823 = vmatpush.msra.mxu0 %v2624_v55  ;;  %v776_v39 = vand.u32 4294901760, %v2656_v34  ;;  %v2666_v43 = vand.u32 4294901760, %v642_v40  ;;  %v614_v55 = vld [vmem:[#allocation2 + $0x118] sm:$0xff] }
  0xed   : > { %889 = vmatpush.msrb.mxu2 %v698_v21  ;;  %v2703_v21 = vand.u32 4294901760, %v632_v13 }
  0xee   : > { %749 = vmatpush.msra.mxu3 %v748_v47  ;;  %826 = vmatpush.msra.mxu0 %v2632_v57  ;;  %v772_v47 = vand.u32 4294901760, %v771_v37  ;;  %v777_v48 = vsub.f32 %v2656_v34, %v776_v39  ;;  %v2675_v52 = vsub.f32 %v642_v40, %v2666_v43  ;;  %v2699_v40 = vsub.f32 %v638_v19, %v2683_v59 }
  0xef   : > { %893 = vmatpush.msrb.mxu2 %v704_v25  ;;  %v2717_v19 = vsub.f32 %v634_v31, %v2701_v14  ;;  %v2720_v17 = vsub.f32 %v632_v13, %v2703_v21 }
  0xf0   : > { %755 = vmatpush.msra.mxu3 %v754_v51  ;;  %829 = vmatpush.msra.mxu0 %v2644_v62  ;;  %v640_v51 = vld [vmem:[#allocation2 + $0x1e8] sm:$0xff]  ;;  %v778_v12 = vand.u32 4294901760, %v777_v48  ;;  %v1027_v45 = vand.u32 4294901760, %v2675_v52 }
  0xf1   : > { %v2677_v54 = vand.u32 4294901760, %v640_v51  ;;  %897 = vmatpush.msrb.mxu2 %v710_v32  ;;  %v1051_v31 = vand.u32 4294901760, %v2717_v19  ;;  %v1057_v13 = vand.u32 4294901760, %v2720_v17 }
  0xf2   : > { %761 = vmatpush.msra.mxu3 %v760_v6  ;;  %832 = vmatpush.msra.mxu0 %v2656_v34  ;;  %v636_v6 = vld [vmem:[#allocation2 + $0x1c8] sm:$0xff]  ;;  %v1028_v20 = vsub.f32 %v2675_v52, %v1027_v45 }
  0xf3   : > { %v2686_v60 = vsub.f32 %v640_v51, %v2677_v54  ;;  %v2696_v37 = vand.u32 4294901760, %v636_v6  ;;  %v1039_v51 = vand.u32 4294901760, %v2699_v40  ;;  %901 = vmatpush.msrb.mxu2 %v716_v38  ;;  %v1052_v32 = vsub.f32 %v2717_v19, %v1051_v31 }
  0xf4   : > { %767 = vmatpush.msra.mxu3 %v766_v35  ;;  %985 = vmatpush.msrb.mxu0 %v2666_v43  ;;  %v2750_v38 = vand.u32 4294901760, %v628_v22 }
  0xf5   : > { %v1033_v35 = vand.u32 4294901760, %v2686_v60  ;;  %v1040_v25 = vsub.f32 %v2699_v40, %v1039_v51  ;;  %905 = vmatpush.msrb.mxu2 %v722_v42 }
  0xf6   : > { %773 = vmatpush.msra.mxu3 %v772_v47  ;;  %987 = vmatpush.msrb.mxu0 %v2677_v54  ;;  %v1029_v47 = vand.u32 4294901760, %v1028_v20 }
  0xf7   : > { %v1034_v48 = vsub.f32 %v2686_v60, %v1033_v35  ;;  %909 = vmatpush.msrb.mxu2 %v728_v27 }
  0xf8   : > { %779 = vmatpush.msra.mxu3 %v778_v12  ;;  %989 = vmatpush.msrb.mxu0 %v2683_v59  ;;  %v2714_v12 = vsub.f32 %v636_v6, %v2696_v37 }
  0xf9   : > { %1030 = vmatpush.msrb.mxu1 %v1029_v47  ;;  %v1058_v47 = vsub.f32 %v2720_v17, %v1057_v13  ;;  %913 = vmatpush.msrb.mxu2 %v734_v28 }
  0xfa   : > { %948 = vmatpush.msrb.mxu3 %v2469_v1  ;;  %v630_v1 = vld [vmem:[#allocation2 + $0x198] sm:$0xff]  ;;  %991 = vmatpush.msrb.mxu0 %v2696_v37  ;;  %v1045_v6 = vand.u32 4294901760, %v2714_v12 }
  0xfb   : > { %v2729_v20 = vand.u32 4294901760, %v630_v1  ;;  %v1059_v26 = vand.u32 4294901760, %v1058_v47  ;;  %v548_v47 = vlaneseq  ;;  %917 = vmatpush.msrb.mxu2 %v740_v29 }
  0xfc   : > { %950 = vmatpush.msrb.mxu3 %v2471_v2  ;;  %v1035_v2 = vand.u32 4294901760, %v1034_v48  ;;  %993 = vmatpush.msrb.mxu0 %v2701_v14  ;;  %v1046_v18 = vsub.f32 %v2714_v12, %v1045_v6 }
  0xfd   : > { %v2753_v48 = vsub.f32 %v630_v1, %v2729_v20  ;;  %v624_v1 = vld [vmem:[#allocation2 + $0x168] sm:$0xff]  ;;  %921 = vmatpush.msrb.mxu2 %v746_v30  ;;  %v618_v30 = vld [vmem:[#allocation2 + $0x138] sm:$0xff] }
  0xfe   : > { %952 = vmatpush.msrb.mxu3 %v2473_v3  ;;  %1036 = vmatpush.msrb.mxu1 %v1035_v2  ;;  %v1041_v3 = vand.u32 4294901760, %v1040_v25  ;;  %v1053_v2 = vand.u32 4294901760, %v1052_v32  ;;  %v626_v25 = vld [vmem:[#allocation2 + $0x178] sm:$0xff]  ;;  %v2773_v27 = vand.u32 4294901760, %v624_v1  ;;  %v2778_v32 = vpop.permute.xlu1 %564 }
  0xff   : > { %995 = vmatpush.msrb.mxu0 %v2703_v21  ;;  %v2760_v42 = vand.u32 4294901760, %v626_v25  ;;  %925 = vmatpush.msrb.mxu2 %v752_v46 }
 0x100   : > { %954 = vmatpush.msrb.mxu3 %v2475_v8  ;;  %1042 = vmatpush.msrb.mxu1 %v1041_v3  ;;  %v1047_v8 = vand.u32 4294901760, %v1046_v18  ;;  %v2763_v3 = vsub.f32 %v628_v22, %v2750_v38 }
 0x101   : > { %997 = vmatpush.msrb.mxu0 %v2729_v20  ;;  %v2776_v18 = vsub.f32 %v626_v25, %v2760_v42  ;;  %v620_v25 = vld [vmem:[#allocation2 + $0x148] sm:$0xff]  ;;  %929 = vmatpush.msrb.mxu2 %v758_v56 }
 0x102   : > { %956 = vmatpush.msrb.mxu3 %v2477_v9  ;;  %1048 = vmatpush.msrb.mxu1 %v1047_v8  ;;  %v1063_v9 = vand.u32 4294901760, %v2753_v48  ;;  %v1069_v11 = vand.u32 4294901760, %v2763_v3  ;;  %v2788_v8 = vand.u32 4294901760, %v622_v16  ;;  %v2800_v29 = vand.u32 4294901760, %v620_v25 }
 0x103   : > { %999 = vmatpush.msrb.mxu0 %v2750_v38  ;;  %v1075_v22 = vand.u32 4294901760, %v2776_v18  ;;  %933 = vmatpush.msrb.mxu2 %v764_v61 }
 0x104   : > { %958 = vmatpush.msrb.mxu3 %v2479_v10  ;;  %1054 = vmatpush.msrb.mxu1 %v1053_v2  ;;  %v1064_v10 = vsub.f32 %v2753_v48, %v1063_v9  ;;  %v1070_v28 = vsub.f32 %v2763_v3, %v1069_v11  ;;  %v2792_v2 = vsub.f32 %v624_v1, %v2773_v27 }
 0x105   : > { %1001 = vmatpush.msrb.mxu0 %v2760_v42  ;;  %v1076_v49 = vsub.f32 %v2776_v18, %v1075_v22  ;;  %937 = vmatpush.msrb.mxu2 %v770_v33 }
 0x106   : > { %960 = vmatpush.msrb.mxu3 %v2492_v15  ;;  %1060 = vmatpush.msrb.mxu1 %v1059_v26  ;;  %v1065_v15 = vand.u32 4294901760, %v1064_v10  ;;  %v2803_v26 = vsub.f32 %v622_v16, %v2788_v8  ;;  %v2805_v10 = vand.u32 127, %v548_v47  ;;  %v1081_v24 = vand.u32 4294901760, %v2792_v2 }
 0x107   : > { %1003 = vmatpush.msrb.mxu0 %v2773_v27  ;;  %v2816_v16 = vsub.f32 %v620_v25, %v2800_v29  ;;  %941 = vmatpush.msrb.mxu2 %v776_v39 }
 0x108   : > { %962 = vmatpush.msrb.mxu3 %v2561_v0  ;;  %1066 = vmatpush.msrb.mxu1 %v1065_v15  ;;  %v1071_v0 = vand.u32 4294901760, %v1070_v28  ;;  %v3542_v1 = vand.u32 4294901760, %v2803_v26  ;;  %v2813_v15 = vand.u32 4294901760, %v618_v30  ;;  %v1082_v47 = vsub.f32 %v2792_v2, %v1081_v24  ;;  %v616_v28 = vld [vmem:[#allocation2 + $0x128] sm:$0xff] }
 0x109   : > { %1005 = vmatpush.msrb.mxu0 %v2788_v8  ;;  %v3543_v41 = vand.u32 4294901760, %v2816_v16  ;;  %v2829_v46 = vand.u32 4294901760, %v616_v28  ;;  %vm552_vm1 = vcmp.eq.s32.totalorder %v2805_v10, 0  ;;  %vm568_vm2 = vcmp.eq.s32.totalorder %v2805_v10, 127  ;;  %v592_v10 = vld [vmem:[#allocation2 + $0x70] sm:$0xff] }
 0x10a   : > { %964 = vmatpush.msrb.mxu3 %v2563_v4  ;;  %1072 = vmatpush.msrb.mxu1 %v1071_v0  ;;  %v1077_v4 = vand.u32 4294901760, %v1076_v49  ;;  %v2832_v25 = vsub.f32 %v618_v30, %v2813_v15  ;;  %v558_v0 = vpop.permute.xlu2 %557  ;;  %v1083_v49 = vand.u32 4294901760, %v1082_v47 }
 0x10b   : > { %1007 = vmatpush.msrb.mxu0 %v2800_v29  ;;  %v1094_v56 = vsub.f32 %v2816_v16, %v3543_v41  ;;  %v2847_v47 = vsub.f32 %v616_v28, %v2829_v46 }
 0x10c   : > { %966 = vmatpush.msrb.mxu3 %v2565_v5  ;;  %1078 = vmatpush.msrb.mxu1 %v1077_v4  ;;  %v1088_v5 = vsub.f32 %v2803_v26, %v3542_v1  ;;  %v1099_v30 = vand.u32 4294901760, %v2832_v25  ;;  %v2843_v4 = vand.u32 4294901760, %v614_v55 }
 0x10d   : > { %1009 = vmatpush.msrb.mxu0 %v2813_v15  ;;  %v1105_v28 = vand.u32 4294901760, %v2847_v47 }
 0x10e   : > { %968 = vmatpush.msrb.mxu3 %v2567_v7  ;;  %v1089_v7 = vand.u32 4294901760, %v1088_v5  ;;  %1084 = vmatpush.msrb.mxu1 %v1083_v49  ;;  %v1100_v61 = vsub.f32 %v2832_v25, %v1099_v30  ;;  %v612_v5 = vld [vmem:[#allocation2 + $0x108] sm:$0xff] }
 0x10f   : > { %1011 = vmatpush.msrb.mxu0 %v2829_v46  ;;  %v2858_v49 = vand.u32 4294901760, %v612_v5 }
 0x110   : > { %970 = vmatpush.msrb.mxu3 %v2601_v36  ;;  %v1095_v36 = vand.u32 4294901760, %v1094_v56  ;;  %1090 = vmatpush.msrb.mxu1 %v1089_v7 }
 0x111   : > { %1013 = vmatpush.msrb.mxu0 %v2843_v4 }
 0x112   : > { %972 = vmatpush.msrb.mxu3 %v2621_v53  ;;  %v2861_v53 = vsub.f32 %v614_v55, %v2843_v4  ;;  %1096 = vmatpush.msrb.mxu1 %v1095_v36 }
 0x113   : > { %1015 = vmatpush.msrb.mxu0 %v2858_v49 }
 0x114   : > { %974 = vmatpush.msrb.mxu3 %v2626_v44  ;;  %v1111_v33 = vand.u32 4294901760, %v2861_v53 }
 0x116   : > { %976 = vmatpush.msrb.mxu3 %v2635_v58  ;;  %v1112_v34 = vsub.f32 %v2861_v53, %v1111_v33 }
 0x118   : > { %978 = vmatpush.msrb.mxu3 %v2647_v63 }
 0x136   : > { %v554_v1 = vpop.permute.xlu1 %553 }
 0x137   : > { %v560_v57 = vsel %vm552_vm1, %v558_v0, %v554_v1  ;;  %v1101_v1 = vand.u32 4294901760, %v1100_v61  ;;  %v2875_v0 = vsub.f32 %v612_v5, %v2858_v49 }
 0x138   : > { %v561_v41 = vadd.f32 %v560_v57, %v2508_v23  ;;  %v1106_v23 = vsub.f32 %v2847_v47, %v1105_v28 }
 0x139   : > { %1102 = vmatpush.msrb.mxu1 %v1101_v1  ;;  %v1117_v39 = vand.u32 4294901760, %v2875_v0 }
 0x13a   : > { %v2867_v62 = vadd.f32 %v2778_v32, %v561_v41  ;;  %v1107_v44 = vand.u32 4294901760, %v1106_v23  ;;  %v1113_v41 = vand.u32 4294901760, %v1112_v34 }
 0x13b   : > { %v1118_v55 = vsub.f32 %v2875_v0, %v1117_v39 }
 0x13c   : > { %1108 = vmatpush.msrb.mxu1 %v1107_v44  ;;  %v3025_v44 = vand.u32 4294901760, %v592_v10 }
 0x13d   : > { %v1119_v7 = vand.u32 4294901760, %v1118_v55 }
 0x13e   : > { %1114 = vmatpush.msrb.mxu1 %v1113_v41  ;;  %v588_v41 = vld [vmem:[#allocation2 + $0x50] sm:$0xff] }
 0x140   : > { %1120 = vmatpush.msrb.mxu1 %v1119_v7 }
 0x14e   : > { %v570_v58 = vpop.permute.xlu0 %569 }
 0x156   : > { %v573_v56 = vpop.permute.xlu0 %572 }
 0x157   : > { %v575_v57 = vsel %vm568_vm2, %v573_v56, %v570_v58  ;;  %v586_v58 = vld [vmem:[#allocation2 + $0x40] sm:$0xff]  ;;  %v3052_v56 = vand.u32 4294901760, %v588_v41 }
 0x158   : > { %v576_v36 = vadd.f32 %v575_v57, %v2549_v50 }
 0x15a   : > { %v577_v61 = vadd.f32 %v576_v36, %v2778_v32  ;;  %v584_v36 = vld [vmem:[#allocation2 + $0x30] sm:$0xff] }
 0x15c   : > { %v2889_v5 = vand.u32 4294901760, %v577_v61 }
 0x15e   : > { %v2892_v63 = vsub.f32 %v577_v61, %v2889_v5  ;;  %781 = vmatmul.f32.vlgmr.msra.gmra.mxu3 %v2889_v5 }
 0x15f   : > { %1181 = vmatpush.msra.mxu3 %v2666_v43 }
 0x160   : > { %835 = vmatmul.f32.vlgmr.msra.gmra.mxu0 %v2892_v63  ;;  %v2898_v1 = vand.u32 4294901760, %v2892_v63 }
 0x161   : > { %1183 = vmatpush.msra.mxu3 %v2677_v54  ;;  %1222 = vmatpush.msra.mxu0 %v1027_v45  ;;  %v604_v45 = vld [vmem:[#allocation2 + $0xd0] sm:$0xff] }
 0x162   : > { %874 = vmatmul.f32.vlgmr.msra.gmra.mxu1 %v2898_v1  ;;  %v678_v50 = vsub.f32 %v2892_v63, %v2898_v1 }
 0x163   : > { %1185 = vmatpush.msra.mxu3 %v2683_v59  ;;  %1226 = vmatpush.msra.mxu0 %v1033_v35 }
 0x164   : > { %1289 = vmatpush.msra.mxu1 %v2666_v43  ;;  %v679_v32 = vand.u32 4294901760, %v678_v50  ;;  %v608_v43 = vld [vmem:[#allocation2 + $0xf0] sm:$0xff] }
 0x165   : > { %1187 = vmatpush.msra.mxu3 %v2696_v37  ;;  %1230 = vmatpush.msra.mxu0 %v1039_v51 }
 0x166   : > { %1291 = vmatpush.msra.mxu1 %v2677_v54  ;;  %680 = vmatmul.f32.vlgmr.msra.gmra.mxu2 %v679_v32  ;;  %v2932_v54 = vand.u32 4294901760, %v608_v43 }
 0x167   : > { %980 = vmatmul.f32.vlgmr.msrb.gmra.mxu3 %v2889_v5  ;;  %1128 = vmatpush.msra.mxu2 %v2675_v52  ;;  %v606_v52 = vld [vmem:[#allocation2 + $0xe0] sm:$0xff] }
 0x168   : > { %1189 = vmatpush.msra.mxu3 %v2701_v14  ;;  %1234 = vmatpush.msra.mxu0 %v1045_v6  ;;  %v2947_v35 = vsub.f32 %v608_v43, %v2932_v54  ;;  %v596_v6 = vld [vmem:[#allocation2 + $0x90] sm:$0xff]  ;;  %v3074_v43 = vsub.f32 %v588_v41, %v3052_v56 }
 0x169   : > { %1293 = vmatpush.msra.mxu1 %v2683_v59  ;;  %1021 = vmatmul.f32.vlgmr.msrb.gmra.mxu0 %v679_v32  ;;  %v2939_v59 = vand.u32 4294901760, %v606_v52 }
 0x16a   : > { %1131 = vmatpush.msra.mxu2 %v2686_v60  ;;  %1191 = vmatpush.msra.mxu3 %v2703_v21  ;;  %v602_v60 = vld [vmem:[#allocation2 + $0xc0] sm:$0xff]  ;;  %v3562_v51 = vand.u32 4294901760, %v2947_v35 }
 0x16b   : > { %1238 = vmatpush.msra.mxu0 %v1051_v31  ;;  %1295 = vmatpush.msra.mxu1 %v2696_v37  ;;  %v2949_v37 = vand.u32 4294901760, %v604_v45 }
 0x16c   : > { %1122 = vmatmul.f32.vlgmr.msrb.gmra.mxu1 %v2889_v5  ;;  %1134 = vmatpush.msra.mxu2 %v2699_v40  ;;  %v600_v40 = vld [vmem:[#allocation2 + $0xb0] sm:$0xff] }
 0x16d   : > { %1193 = vmatpush.msra.mxu3 %v2729_v20  ;;  %1242 = vmatpush.msra.mxu0 %v1057_v13 }
 0x16e   : > { %1297 = vmatpush.msra.mxu1 %v2701_v14  ;;  %1137 = vmatpush.msra.mxu2 %v2714_v12  ;;  %v2957_v14 = vsub.f32 %v606_v52, %v2939_v59  ;;  %v2968_v12 = vsub.f32 %v604_v45, %v2949_v37  ;;  %v3076_v52 = vand.u32 4294901760, %v584_v36  ;;  %v580_v45 = vld [vmem:[#allocation2 + $0x10] sm:$0xff] }
 0x16f   : > { %1195 = vmatpush.msra.mxu3 %v2750_v38  ;;  %1246 = vmatpush.msra.mxu0 %v1063_v9  ;;  %v3576_v9 = vand.u32 4294901760, %v2816_v16 }
 0x170   : > { %1299 = vmatpush.msra.mxu1 %v2703_v21  ;;  %943 = vmatmul.f32.vlgmr.msrb.gmra.mxu2 %v2889_v5  ;;  %v2959_v21 = vand.u32 4294901760, %v602_v60  ;;  %v3560_v31 = vand.u32 4294901760, %v2957_v14 }
 0x171   : > { %1140 = vmatpush.msra.mxu2 %v2717_v19  ;;  %1197 = vmatpush.msra.mxu3 %v2760_v42  ;;  %v2970_v19 = vand.u32 4294901760, %v600_v40 }
 0x172   : > { %1250 = vmatpush.msra.mxu0 %v1069_v11  ;;  %1301 = vmatpush.msra.mxu1 %v2729_v20  ;;  %v3575_v20 = vand.u32 4294901760, %v2803_v26  ;;  %v2979_v13 = vsub.f32 %v602_v60, %v2959_v21 }
 0x173   : > { %1143 = vmatpush.msra.mxu2 %v2720_v17  ;;  %1199 = vmatpush.msra.mxu3 %v2773_v27  ;;  %v598_v17 = vld [vmem:[#allocation2 + $0xa0] sm:$0xff]  ;;  %v2993_v11 = vsub.f32 %v600_v40, %v2970_v19 }
 0x174   : > { %1254 = vmatpush.msra.mxu0 %v1075_v22  ;;  %1303 = vmatpush.msra.mxu1 %v2750_v38  ;;  %v2983_v38 = vand.u32 4294901760, %v598_v17  ;;  %v3558_v22 = vand.u32 4294901760, %v2979_v13 }
 0x175   : > { %1146 = vmatpush.msra.mxu2 %v2753_v48  ;;  %1201 = vmatpush.msra.mxu3 %v2788_v8  ;;  %v594_v48 = vld [vmem:[#allocation2 + $0x80] sm:$0xff] }
 0x176   : > { %1258 = vmatpush.msra.mxu0 %v1081_v24  ;;  %1305 = vmatpush.msra.mxu1 %v2760_v42  ;;  %v1369_v42 = vsub.f32 %v2947_v35, %v3562_v51 }
 0x177   : > { %1149 = vmatpush.msra.mxu2 %v2763_v3  ;;  %1203 = vmatpush.msra.mxu3 %v2800_v29  ;;  %v3559_v3 = vand.u32 4294901760, %v2968_v12 }
 0x178   : > { %1262 = vmatpush.msra.mxu0 %v3575_v20  ;;  %1307 = vmatpush.msra.mxu1 %v2773_v27  ;;  %v2995_v27 = vand.u32 4294901760, %v596_v6  ;;  %v578_v20 = vld [vmem:[#allocation2] sm:$0xff] }
 0x179   : > { %1152 = vmatpush.msra.mxu2 %v2776_v18  ;;  %1205 = vmatpush.msra.mxu3 %v2813_v15  ;;  %v1375_v18 = vsub.f32 %v2957_v14, %v3560_v31  ;;  %v1381_v24 = vsub.f32 %v2968_v12, %v3559_v3  ;;  %v589_v31 = vld [vmem:[#allocation2 + $0x58] sm:$0xff] }
 0x17a   : > { %1266 = vmatpush.msra.mxu0 %v3576_v9  ;;  %1309 = vmatpush.msra.mxu1 %v2788_v8  ;;  %v3006_v8 = vand.u32 4294901760, %v594_v48  ;;  %v3021_v23 = vsub.f32 %v596_v6, %v2995_v27  ;;  %v3549_v9 = vand.u32 4294901760, %v3074_v43 }
 0x17b   : > { %1155 = vmatpush.msra.mxu2 %v2792_v2  ;;  %1207 = vmatpush.msra.mxu3 %v2829_v46  ;;  %v3011_v2 = vsub.f32 %v598_v17, %v2983_v38 }
 0x17c   : > { %1270 = vmatpush.msra.mxu0 %v1099_v30  ;;  %1311 = vmatpush.msra.mxu1 %v2800_v29  ;;  %v1370_v29 = vand.u32 4294901760, %v1369_v42  ;;  %v3556_v30 = vand.u32 4294901760, %v2993_v11  ;;  %v3034_v34 = vsub.f32 %v594_v48, %v3006_v8  ;;  %v3554_v7 = vand.u32 4294901760, %v3021_v23 }
 0x17d   : > { %1158 = vmatpush.msra.mxu2 %v2803_v26  ;;  %1209 = vmatpush.msra.mxu3 %v2843_v4  ;;  %v590_v26 = vld [vmem:[#allocation2 + $0x60] sm:$0xff]  ;;  %v3098_v42 = vsub.f32 %v584_v36, %v3076_v52  ;;  %v609_v36 = vld [vmem:[#allocation2 + $0xf8] sm:$0xff] }
 0x17e   : > { %1274 = vmatpush.msra.mxu0 %v1105_v28  ;;  %1313 = vmatpush.msra.mxu1 %v2813_v15  ;;  %v1376_v15 = vand.u32 4294901760, %v1375_v18  ;;  %v1387_v28 = vsub.f32 %v2979_v13, %v3558_v22  ;;  %v3039_v55 = vand.u32 4294901760, %v590_v26  ;;  %v3553_v57 = vand.u32 4294901760, %v3034_v34 }
 0x17f   : > { %1161 = vmatpush.msra.mxu2 %v2816_v16  ;;  %1211 = vmatpush.msra.mxu3 %v2858_v49  ;;  %v3555_v16 = vand.u32 4294901760, %v3011_v2  ;;  %v1405_v32 = vsub.f32 %v3021_v23, %v3554_v7  ;;  %v3100_v18 = vand.u32 4294901760, %v580_v45 }
 0x180   : > { %1278 = vmatpush.msra.mxu0 %v1111_v33  ;;  %1315 = vmatpush.msra.mxu1 %v2829_v46  ;;  %v1382_v46 = vand.u32 4294901760, %v1381_v24  ;;  %v1393_v33 = vsub.f32 %v2993_v11, %v3556_v30  ;;  %v3062_v61 = vsub.f32 %v590_v26, %v3039_v55  ;;  %v3112_v24 = vand.u32 4294901760, %v578_v20 }
 0x181   : > { %1215 = vmatmul.f32.vlgmr.msra.gmra.mxu3 %v2898_v1  ;;  %1164 = vmatpush.msra.mxu2 %v2832_v25  ;;  %v3050_v25 = vsub.f32 %v592_v10, %v3025_v44  ;;  %v3064_v1 = vand.u32 4294901760, %v586_v58  ;;  %v3122_v41 = vsub.f32 %v580_v45, %v3100_v18 }
 0x182   : > { %1371 = vmatpush.msrb.mxu3 %v1370_v29  ;;  %1282 = vmatpush.msra.mxu0 %v1117_v39  ;;  %v1388_v39 = vand.u32 4294901760, %v1387_v28  ;;  %v1394_v50 = vand.u32 4294901760, %v1393_v33  ;;  %v3550_v40 = vand.u32 4294901760, %v3062_v61  ;;  %v3547_v28 = vand.u32 4294901760, %v3098_v42 }
 0x183   : > { %1317 = vmatpush.msra.mxu1 %v2843_v4  ;;  %1284 = vmatmul.f32.vlgmr.msra.gmra.mxu0 %v2889_v5  ;;  %v1399_v4 = vsub.f32 %v3011_v2, %v3555_v16  ;;  %v3086_v17 = vsub.f32 %v586_v58, %v3064_v1 }
 0x184   : > { %1377 = vmatpush.msrb.mxu3 %v1376_v15  ;;  %1469 = vmatpush.msrb.mxu0 %v2947_v35  ;;  %v1429_v15 = vsub.f32 %v3074_v43, %v3549_v9 }
 0x185   : > { %1167 = vmatpush.msra.mxu2 %v2847_v47  ;;  %1319 = vmatpush.msra.mxu1 %v2858_v49  ;;  %v582_v47 = vld [vmem:[#allocation2 + $0x20] sm:$0xff]  ;;  %v3551_v49 = vand.u32 4294901760, %v3050_v25  ;;  %v1400_v60 = vand.u32 4294901760, %v1399_v4  ;;  %v3548_v10 = vand.u32 4294901760, %v3086_v17 }
 0x186   : > { %1321 = vmatmul.f32.vlgmr.msra.gmra.mxu1 %v2889_v5  ;;  %1383 = vmatpush.msrb.mxu3 %v1382_v46  ;;  %v1411_v5 = vsub.f32 %v3034_v34, %v3553_v57  ;;  %v3088_v6 = vand.u32 4294901760, %v582_v47  ;;  %v1430_v4 = vand.u32 4294901760, %v1429_v15 }
 0x187   : > { %1472 = vmatpush.msrb.mxu0 %v2957_v14  ;;  %1522 = vmatpush.msrb.mxu1 %v2932_v54  ;;  %v1417_v48 = vsub.f32 %v3050_v25, %v3551_v49  ;;  %v1435_v33 = vsub.f32 %v3086_v17, %v3548_v10  ;;  %v597_v10 = vld [vmem:[#allocation2 + $0x98] sm:$0xff] }
 0x188   : > { %1170 = vmatpush.msra.mxu2 %v2861_v53  ;;  %1389 = vmatpush.msrb.mxu3 %v1388_v39  ;;  %v1406_v53 = vand.u32 4294901760, %v1405_v32  ;;  %v3110_v29 = vsub.f32 %v582_v47, %v3088_v6  ;;  %v3132_v39 = vsub.f32 %v578_v20, %v3112_v24  ;;  %v3545_v32 = vand.u32 4294901760, %v3122_v41  ;;  %v607_v47 = vld [vmem:[#allocation2 + $0xe8] sm:$0xff] }
 0x189   : > { %1475 = vmatpush.msrb.mxu0 %v2968_v12  ;;  %1524 = vmatpush.msrb.mxu1 %v2939_v59  ;;  %v1418_v26 = vand.u32 4294901760, %v1417_v48  ;;  %v3214_v49 = vand.u32 4294901760, %v597_v10 }
 0x18a   : > { %1173 = vmatpush.msra.mxu2 %v2875_v0  ;;  %1395 = vmatpush.msrb.mxu3 %v1394_v50  ;;  %v1412_v0 = vand.u32 4294901760, %v1411_v5  ;;  %v3546_v58 = vand.u32 4294901760, %v3110_v29  ;;  %v1441_v50 = vsub.f32 %v3098_v42, %v3547_v28  ;;  %v1436_v5 = vand.u32 4294901760, %v1435_v33  ;;  %v603_v33 = vld [vmem:[#allocation2 + $0xc8] sm:$0xff] }
 0x18b   : > { %1176 = vmatmul.f32.vlgmr.msra.gmra.mxu2 %v2892_v63  ;;  %1478 = vmatpush.msrb.mxu0 %v2979_v13  ;;  %v1423_v63 = vsub.f32 %v3062_v61, %v3550_v40  ;;  %v1453_v48 = vsub.f32 %v3122_v41, %v3545_v32  ;;  %v599_v32 = vld [vmem:[#allocation2 + $0xa8] sm:$0xff] }
 0x18c   : > { %1326 = vmatpush.msrb.mxu2 %v2932_v54  ;;  %1526 = vmatpush.msrb.mxu1 %v2949_v37  ;;  %v1447_v45 = vsub.f32 %v3110_v29, %v3546_v58  ;;  %v1442_v20 = vand.u32 4294901760, %v1441_v50  ;;  %v601_v50 = vld [vmem:[#allocation2 + $0xb8] sm:$0xff] }
 0x18d   : > { %1401 = vmatpush.msrb.mxu3 %v1400_v60  ;;  %1481 = vmatpush.msrb.mxu0 %v2993_v11  ;;  %v1424_v46 = vand.u32 4294901760, %v1423_v63  ;;  %v3544_v60 = vand.u32 4294901760, %v3132_v39  ;;  %v605_v63 = vld [vmem:[#allocation2 + $0xd8] sm:$0xff] }
 0x18e   : > { %1328 = vmatpush.msrb.mxu2 %v2939_v59  ;;  %1528 = vmatpush.msrb.mxu1 %v2959_v21 }
 0x18f   : > { %1407 = vmatpush.msrb.mxu3 %v1406_v53  ;;  %1484 = vmatpush.msrb.mxu0 %v3011_v2  ;;  %v3148_v53 = vand.u32 4294901760, %v609_v36  ;;  %v1459_v15 = vsub.f32 %v3132_v39, %v3544_v60 }
 0x190   : > { %1330 = vmatpush.msrb.mxu2 %v2949_v37  ;;  %1530 = vmatpush.msrb.mxu1 %v2970_v19 }
 0x191   : > { %1413 = vmatpush.msrb.mxu3 %v1412_v0  ;;  %1487 = vmatpush.msrb.mxu0 %v3021_v23  ;;  %v3156_v0 = vand.u32 4294901760, %v607_v47  ;;  %v1460_v58 = vand.u32 4294901760, %v1459_v15  ;;  %v3197_v15 = vand.u32 4294901760, %v599_v32 }
 0x192   : > { %1332 = vmatpush.msrb.mxu2 %v2959_v21  ;;  %1532 = vmatpush.msrb.mxu1 %v2983_v38 }
 0x193   : > { %1419 = vmatpush.msrb.mxu3 %v1418_v26  ;;  %1490 = vmatpush.msrb.mxu0 %v3034_v34  ;;  %v1448_v26 = vand.u32 4294901760, %v1447_v45  ;;  %v1454_v45 = vand.u32 4294901760, %v1453_v48  ;;  %v3176_v60 = vsub.f32 %v607_v47, %v3156_v0 }
 0x194   : > { %1334 = vmatpush.msrb.mxu2 %v2970_v19  ;;  %1534 = vmatpush.msrb.mxu1 %v2995_v27 }
 0x195   : > { %1425 = vmatpush.msrb.mxu3 %v1424_v46  ;;  %1493 = vmatpush.msrb.mxu0 %v3050_v25  ;;  %v3165_v46 = vsub.f32 %v609_v36, %v3148_v53  ;;  %v3180_v36 = vand.u32 4294901760, %v603_v33 }
 0x196   : > { %1336 = vmatpush.msrb.mxu2 %v2983_v38  ;;  %1536 = vmatpush.msrb.mxu1 %v3006_v8 }
 0x197   : > { %1431 = vmatpush.msrb.mxu3 %v1430_v4  ;;  %1496 = vmatpush.msrb.mxu0 %v3062_v61  ;;  %v3169_v4 = vand.u32 4294901760, %v605_v63  ;;  %v3552_v28 = vand.u32 4294901760, %v3165_v46  ;;  %v3202_v9 = vsub.f32 %v603_v33, %v3180_v36 }
 0x198   : > { %1338 = vmatpush.msrb.mxu2 %v2995_v27  ;;  %1538 = vmatpush.msrb.mxu1 %v3025_v44 }
 0x199   : > { %1437 = vmatpush.msrb.mxu3 %v1436_v5  ;;  %1499 = vmatpush.msrb.mxu0 %v3074_v43  ;;  %v3172_v5 = vand.u32 4294901760, %v2867_v62  ;;  %v3189_v47 = vsub.f32 %v605_v63, %v3169_v4  ;;  %v3563_v57 = vand.u32 4294901760, %v3202_v9 }
 0x19a   : > { %1340 = vmatpush.msrb.mxu2 %v3006_v8  ;;  %1540 = vmatpush.msrb.mxu1 %v3039_v55 }
 0x19b   : > { %1443 = vmatpush.msrb.mxu3 %v1442_v20  ;;  %1502 = vmatpush.msrb.mxu0 %v3086_v17  ;;  %v3184_v20 = vand.u32 4294901760, %v601_v50  ;;  %v3193_v48 = vsub.f32 %v2867_v62, %v3172_v5  ;;  %v1710_v62 = vsub.f32 %v3165_v46, %v3552_v28  ;;  %v3561_v40 = vand.u32 4294901760, %v3189_v47  ;;  %v593_v28 = vld [vmem:[#allocation2 + $0x78] sm:$0xff] }
 0x19c   : > { %1342 = vmatpush.msrb.mxu2 %v3025_v44  ;;  %1542 = vmatpush.msrb.mxu1 %v3052_v56  ;;  %v3243_v22 = vand.u32 4294901760, %v593_v28 }
 0x19d   : > { %1449 = vmatpush.msrb.mxu3 %v1448_v26  ;;  %1505 = vmatpush.msrb.mxu0 %v3098_v42  ;;  %3577 = vst [vmem:[#allocation8_spill] sm:$0xff] %v3193_v48  ;;  %v3557_v26 = vand.u32 4294901760, %v3176_v60  ;;  %v3209_v63 = vsub.f32 %v601_v50, %v3184_v20  ;;  %v3225_v50 = vsub.f32 %v599_v32, %v3197_v15  ;;  %v1711_v16 = vand.u32 4294901760, %v1710_v62 }
 0x19e   : > { %1344 = vmatpush.msrb.mxu2 %v3039_v55  ;;  %1544 = vmatpush.msrb.mxu1 %v3064_v1  ;;  %v3241_v32 = vsub.f32 %v597_v10, %v3214_v49  ;;  %v1728_v10 = vsub.f32 %v3202_v9, %v3563_v57 }
 0x19f   : > { %1455 = vmatpush.msrb.mxu3 %v1454_v45  ;;  %1508 = vmatpush.msrb.mxu0 %v3110_v29  ;;  %3578 = vst [vmem:[#allocation9_spill] sm:$0xff] %v3209_v63  ;;  %v595_v45 = vld [vmem:[#allocation2 + $0x88] sm:$0xff]  ;;  %v1716_v33 = vsub.f32 %v3176_v60, %v3557_v26  ;;  %v3565_v30 = vand.u32 4294901760, %v3209_v63 }
 0x1a0   : > { %1346 = vmatpush.msrb.mxu2 %v3052_v56  ;;  %1546 = vmatpush.msrb.mxu1 %v3076_v52  ;;  %3580 = vst [vmem:[#allocation11_spill] sm:$0xff] %v3225_v50  ;;  %v3230_v7 = vand.u32 4294901760, %v595_v45  ;;  %v591_v26 = vld [vmem:[#allocation2 + $0x68] sm:$0xff] }
 0x1a1   : > { %1461 = vmatpush.msrb.mxu3 %v1460_v58  ;;  %1511 = vmatpush.msrb.mxu0 %v3122_v41  ;;  %v3219_v58 = vand.u32 4294901760, %v3193_v48  ;;  %3581 = vst [vmem:[#allocation12_spill] sm:$0xff] %v3241_v32  ;;  %v1717_v62 = vand.u32 4294901760, %v1716_v33  ;;  %v3258_v51 = vand.u32 4294901760, %v591_v26  ;;  %v1734_v33 = vsub.f32 %v3209_v63, %v3565_v30  ;;  %v585_v63 = vld [vmem:[#allocation2 + $0x38] sm:$0xff] }
 0x1a2   : > { %1348 = vmatpush.msrb.mxu2 %v3064_v1  ;;  %1548 = vmatpush.msrb.mxu1 %v3088_v6  ;;  %v3582_v30 = vand.u32 4294901760, %v3225_v50 }
 0x1a3   : > { %1463 = vmatmul.f32.vlgmr.msrb.gmra.mxu3 %v3172_v5  ;;  %1514 = vmatpush.msrb.mxu0 %v3132_v39  ;;  %3579 = vst [vmem:[#allocation10_spill] sm:$0xff] %v3219_v58  ;;  %v1360_v3 = vsub.f32 %v3193_v48, %v3219_v58 }
 0x1a4   : > { %1630 = vmatpush.msra.mxu3 %v2932_v54  ;;  %1350 = vmatpush.msrb.mxu2 %v3076_v52  ;;  %v1722_v54 = vsub.f32 %v3189_v47, %v3561_v40  ;;  %v3256_v40 = vsub.f32 %v595_v45, %v3230_v7  ;;  %v3268_v45 = vsub.f32 %v593_v28, %v3243_v22 }
 0x1a5   : > { %1550 = vmatpush.msrb.mxu1 %v3100_v18  ;;  %1517 = vmatmul.f32.vlgmr.msrb.gmra.mxu0 %v3193_v48  ;;  %v3270_v48 = vand.u32 4294901760, %v589_v31 }
 0x1a6   : > { %1632 = vmatpush.msra.mxu3 %v2939_v59  ;;  %1667 = vmatpush.msra.mxu0 %v3148_v53  ;;  %v587_v59 = vld [vmem:[#allocation2 + $0x48] sm:$0xff] }
 0x1a7   : > { %1352 = vmatpush.msrb.mxu2 %v3088_v6  ;;  %1552 = vmatpush.msrb.mxu1 %v3112_v24  ;;  %v3284_v57 = vand.u32 4294901760, %v587_v59 }
 0x1a8   : > { %1556 = vmatmul.f32.vlgmr.msrb.gmra.mxu1 %v3219_v58  ;;  %1634 = vmatpush.msra.mxu3 %v2949_v37  ;;  %v1723_v37 = vand.u32 4294901760, %v1722_v54  ;;  %v1740_v58 = vsub.f32 %v3225_v50, %v3582_v30  ;;  %v3282_v54 = vsub.f32 %v591_v26, %v3258_v51  ;;  %v3583_v30 = vand.u32 4294901760, %v2947_v35 }
 0x1a9   : > { %1669 = vmatpush.msra.mxu0 %v3156_v0  ;;  %1712 = vmatpush.msra.mxu1 %v1711_v16  ;;  %v3273_v16 = vand.u32 4294901760, %v1360_v3  ;;  %v1735_v3 = vand.u32 4294901760, %v1734_v33  ;;  %v3295_v26 = vsub.f32 %v589_v31, %v3270_v48  ;;  %v3297_v50 = vand.u32 4294901760, %v585_v63 }
 0x1aa   : > { %1354 = vmatpush.msrb.mxu2 %v3100_v18  ;;  %1636 = vmatpush.msra.mxu3 %v2959_v21  ;;  %v1729_v21 = vand.u32 4294901760, %v1728_v10  ;;  %v1741_v33 = vand.u32 4294901760, %v1740_v58  ;;  %v3585_v35 = vand.u32 4294901760, %v2957_v14  ;;  %v3308_v31 = vsub.f32 %v587_v59, %v3284_v57 }
 0x1ab   : > { %1671 = vmatpush.msra.mxu0 %v3169_v4  ;;  %1718 = vmatpush.msra.mxu1 %v1717_v62  ;;  %v583_v62 = vld [vmem:[#allocation2 + $0x28] sm:$0xff]  ;;  %v3587_v14 = vand.u32 4294901760, %v2968_v12  ;;  %v3588_v58 = vand.u32 4294901760, %v3268_v45  ;;  %v3321_v59 = vsub.f32 %v585_v63, %v3297_v50  ;;  %v3589_v12 = vand.u32 4294901760, %v2979_v13 }
 0x1ac   : > { %1356 = vmatpush.msrb.mxu2 %v3112_v24  ;;  %1638 = vmatpush.msra.mxu3 %v2970_v19  ;;  %v3584_v19 = vand.u32 4294901760, %v3241_v32  ;;  %v3310_v28 = vand.u32 4294901760, %v583_v62  ;;  %v3590_v13 = vand.u32 4294901760, %v2993_v11 }
 0x1ad   : > { %1362 = vmatmul.f32.vlgmr.msrb.gmra.mxu2 %v3273_v16  ;;  %1673 = vmatpush.msra.mxu0 %v3180_v36 }
 0x1ae   : > { %1563 = vmatpush.msra.mxu2 %v3583_v30  ;;  %1724 = vmatpush.msra.mxu1 %v1723_v37  ;;  %v1746_v10 = vsub.f32 %v3241_v32, %v3584_v19  ;;  %v3586_v37 = vand.u32 4294901760, %v3256_v40  ;;  %v1763_v19 = vand.u32 4294901760, %v3282_v54  ;;  %v581_v32 = vld [vmem:[#allocation2 + $0x18] sm:$0xff]  ;;  %v3334_v63 = vsub.f32 %v583_v62, %v3310_v28 }
 0x1af   : > { %1640 = vmatpush.msra.mxu3 %v2983_v38  ;;  %1675 = vmatpush.msra.mxu0 %v3184_v20  ;;  %v3591_v62 = vand.u32 4294901760, %v3011_v2 }
 0x1b0   : > { %1567 = vmatpush.msra.mxu2 %v3585_v35  ;;  %1730 = vmatpush.msra.mxu1 %v1729_v21  ;;  %v1752_v30 = vsub.f32 %v3256_v40, %v3586_v37  ;;  %v1747_v38 = vand.u32 4294901760, %v1746_v10  ;;  %v1758_v21 = vsub.f32 %v3268_v45, %v3588_v58  ;;  %v1769_v35 = vand.u32 4294901760, %v3295_v26  ;;  %v579_v37 = vld [vmem:[#allocation2 + $0x8] sm:$0xff] }
 0x1b1   : > { %1642 = vmatpush.msra.mxu3 %v2995_v27  ;;  %1677 = vmatpush.msra.mxu0 %v3197_v15  ;;  %v3325_v27 = vand.u32 4294901760, %v581_v32  ;;  %v1764_v10 = vsub.f32 %v3282_v54, %v1763_v19  ;;  %v1781_v58 = vand.u32 4294901760, %v3321_v59 }
 0x1b2   : > { %1571 = vmatpush.msra.mxu2 %v3587_v14  ;;  %1736 = vmatpush.msra.mxu1 %v1735_v3  ;;  %v1753_v3 = vand.u32 4294901760, %v1752_v30  ;;  %v1775_v14 = vand.u32 4294901760, %v3308_v31  ;;  %v1770_v30 = vsub.f32 %v3295_v26, %v1769_v35 }
 0x1b3   : > { %1644 = vmatpush.msra.mxu3 %v3006_v8  ;;  %1679 = vmatpush.msra.mxu0 %v3214_v49  ;;  %v3338_v8 = vand.u32 4294901760, %v579_v37  ;;  %v1765_v11 = vand.u32 4294901760, %v1764_v10 }
 0x1b4   : > { %1575 = vmatpush.msra.mxu2 %v3589_v12  ;;  %1742 = vmatpush.msra.mxu1 %v1741_v33  ;;  %v1759_v33 = vand.u32 4294901760, %v1758_v21  ;;  %v1787_v21 = vand.u32 4294901760, %v3334_v63  ;;  %v1771_v2 = vand.u32 4294901760, %v1770_v30  ;;  %v1782_v12 = vsub.f32 %v3321_v59, %v1781_v58 }
 0x1b5   : > { %1646 = vmatpush.msra.mxu3 %v3025_v44  ;;  %1681 = vmatpush.msra.mxu0 %v3230_v7  ;;  %v3349_v44 = vsub.f32 %v581_v32, %v3325_v27  ;;  %v3592_v32 = vand.u32 4294901760, %v3021_v23  ;;  %v3597_v30 = vand.u32 4294901760, %v3086_v17  ;;  %v3600_v17 = vand.u32 4294901760, %v3110_v29 }
 0x1b6   : > { %1579 = vmatpush.msra.mxu2 %v3590_v13  ;;  %1748 = vmatpush.msra.mxu1 %v1747_v38  ;;  %v1776_v38 = vsub.f32 %v3308_v31, %v1775_v14  ;;  %v1788_v23 = vsub.f32 %v3334_v63, %v1787_v21  ;;  %v1783_v13 = vand.u32 4294901760, %v1782_v12  ;;  %v3604_v29 = vand.u32 4294901760, %v3132_v39  ;;  %v3608_v39 = vld [vmem:[#allocation11_spill] sm:$0xff] }
 0x1b7   : > { %1648 = vmatpush.msra.mxu3 %v3039_v55  ;;  %1683 = vmatpush.msra.mxu0 %v3243_v22  ;;  %v3360_v55 = vsub.f32 %v579_v37, %v3338_v8 }
 0x1b8   : > { %1583 = vmatpush.msra.mxu2 %v3591_v62  ;;  %1754 = vmatpush.msra.mxu1 %v1753_v3  ;;  %v3593_v3 = vand.u32 4294901760, %v3034_v34  ;;  %v1777_v37 = vand.u32 4294901760, %v1776_v38  ;;  %v3601_v62 = vand.u32 4294901760, %v3176_v60 }
 0x1b9   : > { %1650 = vmatpush.msra.mxu3 %v3052_v56  ;;  %1685 = vmatpush.msra.mxu0 %v3258_v51  ;;  %v1793_v56 = vand.u32 4294901760, %v3349_v44  ;;  %v1799_v10 = vand.u32 4294901760, %v3360_v55 }
 0x1ba   : > { %1587 = vmatpush.msra.mxu2 %v3592_v32  ;;  %1760 = vmatpush.msra.mxu1 %v1759_v33  ;;  %v3595_v33 = vand.u32 4294901760, %v3062_v61 }
 0x1bb   : > { %1652 = vmatpush.msra.mxu3 %v3064_v1  ;;  %1687 = vmatpush.msra.mxu0 %v3270_v48  ;;  %v3594_v1 = vand.u32 4294901760, %v3050_v25  ;;  %v1794_v34 = vsub.f32 %v3349_v44, %v1793_v56  ;;  %v1800_v25 = vsub.f32 %v3360_v55, %v1799_v10 }
 0x1bc   : > { %1591 = vmatpush.msra.mxu2 %v3593_v3  ;;  %1766 = vmatpush.msra.mxu1 %v1765_v11  ;;  %v3605_v11 = vand.u32 4294901760, %v3202_v9 }
 0x1bd   : > { %1654 = vmatpush.msra.mxu3 %v3076_v52  ;;  %1689 = vmatpush.msra.mxu0 %v3284_v57  ;;  %v1789_v52 = vand.u32 4294901760, %v1788_v23  ;;  %v1795_v61 = vand.u32 4294901760, %v1794_v34 }
 0x1be   : > { %1595 = vmatpush.msra.mxu2 %v3594_v1  ;;  %1772 = vmatpush.msra.mxu1 %v1771_v2 }
 0x1bf   : > { %1656 = vmatpush.msra.mxu3 %v3088_v6  ;;  %1691 = vmatpush.msra.mxu0 %v3297_v50  ;;  %v3596_v6 = vand.u32 4294901760, %v3074_v43  ;;  %v3598_v43 = vand.u32 4294901760, %v3098_v42  ;;  %v3602_v42 = vand.u32 4294901760, %v3122_v41  ;;  %v3606_v41 = vld [vmem:[#allocation9_spill] sm:$0xff] }
 0x1c0   : > { %1599 = vmatpush.msra.mxu2 %v3595_v33  ;;  %1778 = vmatpush.msra.mxu1 %v1777_v37 }
 0x1c1   : > { %1658 = vmatpush.msra.mxu3 %v3100_v18  ;;  %1693 = vmatpush.msra.mxu0 %v3310_v28  ;;  %v1801_v18 = vand.u32 4294901760, %v1800_v25 }
 0x1c2   : > { %1603 = vmatpush.msra.mxu2 %v3596_v6  ;;  %1784 = vmatpush.msra.mxu1 %v1783_v13 }
 0x1c3   : > { %1660 = vmatpush.msra.mxu3 %v3112_v24  ;;  %1695 = vmatpush.msra.mxu0 %v3325_v27  ;;  %v3599_v24 = vand.u32 4294901760, %v3165_v46 }
 0x1c4   : > { %1607 = vmatpush.msra.mxu2 %v3597_v30  ;;  %1790 = vmatpush.msra.mxu1 %v1789_v52 }
 0x1c5   : > { %1662 = vmatmul.f32.vlgmr.msra.gmra.mxu3 %v3172_v5  ;;  %1697 = vmatpush.msra.mxu0 %v3338_v8 }
 0x1c6   : > { %1863 = vmatpush.msrb.mxu3 %v3148_v53  ;;  %1611 = vmatpush.msra.mxu2 %v3598_v43 }
 0x1c7   : > { %1796 = vmatpush.msra.mxu1 %v1795_v61  ;;  %1703 = vmatmul.f32.vlgmr.msra.gmra.mxu0 %v3273_v16  ;;  %v3603_v16 = vand.u32 4294901760, %v3189_v47 }
 0x1c8   : > { %1865 = vmatpush.msrb.mxu3 %v3156_v0  ;;  %1904 = vmatpush.msrb.mxu0 %v3599_v24 }
 0x1c9   : > { %1615 = vmatpush.msra.mxu2 %v3600_v17  ;;  %1802 = vmatpush.msra.mxu1 %v1801_v18 }
 0x1ca   : > { %1804 = vmatmul.f32.vlgmr.msra.gmra.mxu1 %v3172_v5  ;;  %1867 = vmatpush.msrb.mxu3 %v3169_v4 }
 0x1cb   : > { %1908 = vmatpush.msrb.mxu0 %v3601_v62  ;;  %1971 = vmatpush.msrb.mxu1 %v3148_v53  ;;  %v3607_v53 = vand.u32 4294901760, %v3606_v41 }
 0x1cc   : > { %1619 = vmatpush.msra.mxu2 %v3602_v42  ;;  %1869 = vmatpush.msrb.mxu3 %v3180_v36 }
 0x1cd   : > { %1912 = vmatpush.msrb.mxu0 %v3603_v16  ;;  %1973 = vmatpush.msrb.mxu1 %v3156_v0  ;;  %v3609_v0 = vand.u32 4294901760, %v3608_v39 }
 0x1ce   : > { %1623 = vmatpush.msra.mxu2 %v3604_v29  ;;  %1871 = vmatpush.msrb.mxu3 %v3184_v20 }
 0x1cf   : > { %1625 = vmatmul.f32.vlgmr.msra.gmra.mxu2 %v3172_v5  ;;  %1916 = vmatpush.msrb.mxu0 %v3605_v11 }
 0x1d0   : > { %1810 = vmatpush.msrb.mxu2 %v3165_v46  ;;  %1975 = vmatpush.msrb.mxu1 %v3169_v4  ;;  %v3610_v46 = vld [vmem:[#allocation12_spill] sm:$0xff] }
 0x1d1   : > { %1873 = vmatpush.msrb.mxu3 %v3197_v15  ;;  %1920 = vmatpush.msrb.mxu0 %v3607_v53  ;;  %v3611_v4 = vand.u32 4294901760, %v3610_v46 }
 0x1d2   : > { %1813 = vmatpush.msrb.mxu2 %v3176_v60  ;;  %1977 = vmatpush.msrb.mxu1 %v3180_v36  ;;  %v3612_v60 = vand.u32 4294901760, %v3256_v40  ;;  %v3613_v36 = vand.u32 4294901760, %v3268_v45 }
 0x1d3   : > { %1875 = vmatpush.msrb.mxu3 %v3214_v49  ;;  %1924 = vmatpush.msrb.mxu0 %v3609_v0 }
 0x1d4   : > { %1816 = vmatpush.msrb.mxu2 %v3189_v47  ;;  %1979 = vmatpush.msrb.mxu1 %v3184_v20 }
 0x1d5   : > { %1877 = vmatpush.msrb.mxu3 %v3230_v7  ;;  %1928 = vmatpush.msrb.mxu0 %v3611_v4 }
 0x1d6   : > { %1819 = vmatpush.msrb.mxu2 %v3202_v9  ;;  %1981 = vmatpush.msrb.mxu1 %v3197_v15 }
 0x1d7   : > { %1879 = vmatpush.msrb.mxu3 %v3243_v22  ;;  %1932 = vmatpush.msrb.mxu0 %v3612_v60 }
 0x1d8   : > { %1822 = vmatpush.msrb.mxu2 %v3606_v41  ;;  %1983 = vmatpush.msrb.mxu1 %v3214_v49 }
 0x1d9   : > { %1881 = vmatpush.msrb.mxu3 %v3258_v51  ;;  %1936 = vmatpush.msrb.mxu0 %v3613_v36 }
 0x1da   : > { %1825 = vmatpush.msrb.mxu2 %v3608_v39  ;;  %1985 = vmatpush.msrb.mxu1 %v3230_v7 }
 0x1db   : > { %1883 = vmatpush.msrb.mxu3 %v3270_v48  ;;  %1940 = vmatpush.msrb.mxu0 %v1763_v19 }
 0x1dc   : > { %1828 = vmatpush.msrb.mxu2 %v3610_v46  ;;  %1987 = vmatpush.msrb.mxu1 %v3243_v22  ;;  %v3615_v22 = vld [vmem:[#allocation8_spill] sm:$0xff] }
 0x1dd   : > { %1885 = vmatpush.msrb.mxu3 %v3284_v57  ;;  %1944 = vmatpush.msrb.mxu0 %v1769_v35  ;;  %v836_v49 = vpop.f32.mrf.mxu0 }
 0x1de   : > { %1831 = vmatpush.msrb.mxu2 %v3256_v40  ;;  %1989 = vmatpush.msrb.mxu1 %v3258_v51  ;;  %v3614_v51 = vld [vmem:[#allocation10_spill] sm:$0xff] }
 0x1df   : > { %1887 = vmatpush.msrb.mxu3 %v3297_v50  ;;  %1948 = vmatpush.msrb.mxu0 %v1775_v14  ;;  %v875_v20 = vpop.f32.mrf.mxu1 }
 0x1e0   : > { %1834 = vmatpush.msrb.mxu2 %v3268_v45  ;;  %1991 = vmatpush.msrb.mxu1 %v3270_v48 }
 0x1e1   : > { %1889 = vmatpush.msrb.mxu3 %v3310_v28  ;;  %1952 = vmatpush.msrb.mxu0 %v1781_v58 }
 0x1e2   : > { %1837 = vmatpush.msrb.mxu2 %v3282_v54  ;;  %1993 = vmatpush.msrb.mxu1 %v3284_v57  ;;  %v782_v57 = vpop.f32.mrf.mxu3 }
 0x1e3   : > { %1891 = vmatpush.msrb.mxu3 %v3325_v27  ;;  %1956 = vmatpush.msrb.mxu0 %v1787_v21 }
 0x1e4   : > { %1840 = vmatpush.msrb.mxu2 %v3295_v26  ;;  %1995 = vmatpush.msrb.mxu1 %v3297_v50 }
 0x1e5   : > { %1893 = vmatpush.msrb.mxu3 %v3338_v8  ;;  %1960 = vmatpush.msrb.mxu0 %v1793_v56 }
 0x1e6   : > { %1843 = vmatpush.msrb.mxu2 %v3308_v31  ;;  %1997 = vmatpush.msrb.mxu1 %v3310_v28  ;;  %v1022_v50 = vpop.f32.mrf.mxu0 }
 0x1e7   : > { %1897 = vmatmul.f32.vlgmr.msrb.gmra.mxu3 %v3614_v51  ;;  %1964 = vmatpush.msrb.mxu0 %v1799_v10 }
 0x1e8   : > { %1846 = vmatpush.msrb.mxu2 %v3321_v59  ;;  %1999 = vmatpush.msrb.mxu1 %v3325_v27 }
 0x1e9   : > { %1966 = vmatmul.f32.vlgmr.msrb.gmra.mxu0 %v3172_v5  ;;  %v681_v7 = vpop.f32.mrf.mxu2  ;;  %v1123_v28 = vpop.f32.mrf.mxu1 }
 0x1ea   : > { %1849 = vmatpush.msrb.mxu2 %v3334_v63  ;;  %2001 = vmatpush.msrb.mxu1 %v3338_v8  ;;  %v783_v9 = vadd.f32 %v782_v57, %v681_v7  ;;  %v981_v47 = vpop.f32.mrf.mxu3  ;;  %v1124_v2 = vadd.f32 %v1123_v28, %v1022_v50 }
 0x1eb   : > { %2003 = vmatmul.f32.vlgmr.msrb.gmra.mxu1 %v3172_v5 }
 0x1ec   : > { %1852 = vmatpush.msrb.mxu2 %v3349_v44  ;;  %v837_v48 = vadd.f32 %v836_v49, %v783_v9 }
 0x1ee   : > { %1855 = vmatpush.msrb.mxu2 %v3360_v55  ;;  %v876_v45 = vadd.f32 %v875_v20, %v837_v48 }
 0x1ef   : > { %1858 = vmatmul.f32.vlgmr.msrb.gmra.mxu2 %v3615_v22 }
 0x1f3   : > { %v944_v40 = vpop.f32.mrf.mxu2 }
 0x1f4   : > { %v945_v5 = vadd.f32 %v944_v40, %v876_v45 }
 0x1f6   : > { %v982_v19 = vadd.f32 %v981_v47, %v945_v5 }
 0x200   : > { %v1285_v31 = vpop.f32.mrf.mxu0 }
 0x203   : > { %v1322_v59 = vpop.f32.mrf.mxu1 }
 0x204   : > { %v1216_v54 = vpop.f32.mrf.mxu3 }
 0x20e   : > { %v1177_v15 = vpop.f32.mrf.mxu2 }
 0x20f   : > { %v1178_v12 = vadd.f32 %v1177_v15, %v1124_v2 }
 0x211   : > { %v1217_v56 = vadd.f32 %v1216_v54, %v1178_v12 }
 0x213   : > { %v1286_v3 = vadd.f32 %v1285_v31, %v1217_v56 }
 0x215   : > { %v1323_v23 = vadd.f32 %v1322_v59, %v1286_v3 }
 0x222   : > { %v1518_v63 = vpop.f32.mrf.mxu0 }
 0x225   : > { %v1557_v58 = vpop.f32.mrf.mxu1 }
 0x226   : > { %v1464_v27 = vpop.f32.mrf.mxu3 }
 0x230   : > { %v1363_v26 = vpop.f32.mrf.mxu2 }
 0x231   : > { %v1364_v35 = vadd.f32 %v1363_v26, %v982_v19 }
 0x233   : > { %v1465_v14 = vadd.f32 %v1464_v27, %v1364_v35 }
 0x235   : > { %v1519_v8 = vadd.f32 %v1518_v63, %v1465_v14 }
 0x237   : > { %v1558_v44 = vadd.f32 %v1557_v58, %v1519_v8 }
 0x244   : > { %v1704_v37 = vpop.f32.mrf.mxu0 }
 0x245   : > { %v1705_v10 = vadd.f32 %v1704_v37, %v1323_v23 }
 0x247   : > { %v1805_v1 = vpop.f32.mrf.mxu1 }
 0x248   : > { %v1663_v55 = vpop.f32.mrf.mxu3  ;;  %v1806_v13 = vadd.f32 %v1805_v1, %v1705_v10 }
 0x252   : > { %v1626_v38 = vpop.f32.mrf.mxu2 }
 0x253   : > { %v1627_v21 = vadd.f32 %v1626_v38, %v1558_v44 }
 0x255   : > { %v1664_v32 = vadd.f32 %v1663_v55, %v1627_v21 }
 0x257   : > { %2007 = vst [vmem:[%s275_s29] sm:$0xff] %v1664_v32 }
 0x266   : > { %v1967_v6 = vpop.f32.mrf.mxu0 }
 0x268   : > { %v2004_v30 = vpop.f32.mrf.mxu1 }
 0x26a   : > { %v1898_v52 = vpop.f32.mrf.mxu3 }
 0x272   : > { %v1859_v34 = vpop.f32.mrf.mxu2 }
 0x273   : > { %v1860_v33 = vadd.f32 %v1859_v34, %v1806_v13 }
 0x275   : > { %v1899_v25 = vadd.f32 %v1898_v52, %v1860_v33 }
 0x277   : > { %v1968_v61 = vadd.f32 %v1967_v6, %v1899_v25 }
 0x279   : > { %v2005_v18 = vadd.f32 %v2004_v30, %v1968_v61 }
 0x27b   : > { %2008 = vst [vmem:[%s275_s29 + $0x8] sm:$0xff] %v2005_v18 }
 0x27c   : > { %2278 = shalt.err (!%p2275_p9)
}
 0x27d   : > { %2150 = dma.vmem_to_hbm [thread:$0]  (%p2412_p4), %s2026_s11, 256, %s2028_s12, %s2010_s21  }
 0x27e PF: > { %p2162_p10 = scmp.ge.s32.totalorder %s2333_s23, 2  ;;  %s2039_s25 = sand.u32 1, %s2313_s18  }
 0x27f   : > { %s2040_s29 = scalar_lea.sflag [#allocation4], %s2039_s25 }
 0x280   : > { %p2157_p11 = pnand %p2162_p10, %p2419_p8 }
 0x282   : > { %p2158_p12 = pneg %p2157_p11 }
 0x284   : > { %2308 = dma.done.wait (%p2158_p12), %s2040_s29, 256  }
 0x285   : > { %2310 = vsyncadd (%p2158_p12), %s2040_s29, 4294967040  ;;  %s19_s23 = sadd.s32 1, %s2333_s23   ;;  %s3616_s18 = smov %s2317_s19 }
 0x286   : > { %p16_p13 = scmp.ge.s32.totalorder %s19_s23, 4   ;;  %s3617_s19 = smov %s2321_s20 }
 0x287   : > { %s3618_s20 = smov %s2425_s6  ;;  %s3619_s21 = smov %s2329_s22 }
 0x288   : > { %s3620_s22 = smov %s3622_s26  ;;  %18 = sbr.rel (!%p16_p13) target bundleno = 5 (0x5), region = 84 }
 0x28d   :  { %2046 = vsyncpa [#allocation3], 1 }
 0x28e   :  { %2048 = vsyncpa [#allocation3 + $0x1], 1 }
 0x28f   :  { %2049 = vsyncpa [#allocation4], 1 }
 0x290   :  { %2051 = vsyncpa [#allocation4 + $0x1], 1 }

</bundles_post_ra>
